<compile_context>
chip_gen: v5e
topology: v5e:2x2
jax: 0.10.0
libtpu: 0.0.40
codegen_flags: <defaults>
</compile_context>

<pallas_src>
import functools
import math

import numpy as np
import jax
import jax.numpy as jnp
from jax import lax
from jax.experimental import pallas as pl
from jax.experimental.pallas import tpu as pltpu


def _round_up(x, m):
    return (x + m - 1) // m * m


def _pick_vmem_limit():
    """~48 MiB on 64 MiB (v7x-class) parts, ~100 MiB on 128 MiB (v5e/v6e) parts."""
    try:
        cap = int(pltpu.get_tpu_info().vmem_capacity_bytes)
    except Exception:
        cap = 64 * 1024 * 1024
    return int(min(max(cap - 16 * 1024 * 1024, 32 * 1024 * 1024),
                   100 * 1024 * 1024))


# ---------------------------------------------------------------------------
# rel_shift helper
# ---------------------------------------------------------------------------
# The host windows + pre-rotates the projected positional table per q-tile, so
# the in-kernel rel_shift reduces to: rotate row r of bd right by r lanes, then
# keep the first T columns.
def _rel_shift_rows(bd, t_len, use_strided_roll):
    tq, w = bd.shape
    if use_strided_roll:
        # Single strided XLU rotate: row r is rolled right by (0 + r * 1).
        rolled = pltpu.roll(bd, 0, 1, stride=1, stride_axis=0)
    else:
        # Fallback: log2(Tq) rotate-and-select network (correctness-only path).
        row = lax.broadcasted_iota(jnp.int32, (tq, 1), 0)
        rolled = bd
        b = 1
        while b < tq:
            rot = jnp.concatenate([rolled[:, w - b:], rolled[:, :w - b]], axis=1)
            rolled = jnp.where((row & b) != 0, rot, rolled)
            b *= 2
    return rolled[:, :t_len]


def _strided_roll_matches_numpy():
    """One-time probe: does pltpu.roll(+stride) follow np.roll semantics here?"""
    def k(x_ref, o_ref):
        o_ref[...] = pltpu.roll(x_ref[...], 0, 1, stride=1, stride_axis=0)

    x = lax.broadcasted_iota(jnp.float32, (8, 128), 1)
    try:
        out = pl.pallas_call(
            k, out_shape=jax.ShapeDtypeStruct((8, 128), jnp.float32))(x)
        out = np.asarray(jax.block_until_ready(out))
    except Exception:
        return False
    expected = np.stack(
        [np.roll(np.arange(128, dtype=np.float32), i) for i in range(8)])
    return bool(np.array_equal(out, expected))


# ---------------------------------------------------------------------------
# Kernel: one (batch, q_tile, head) grid step
# ---------------------------------------------------------------------------
def _relpos_mha_kernel(
    q_in, k_in, v_in, mask_in, p_ref,
    wq, bqu, bqv, wk, bk, wv, bv, wo, bo,
    out_ref,
    qu_all, qv_all, k_all, v_all, ctx_all,
    *, n_head, d_k, t_len, use_strided_roll,
):
    h = pl.program_id(2)
    neg_min = float(np.finfo(np.float32).min)   # torch masked_fill value for f32

    # Full-F projections once per (batch, q-tile): N=F-wide MXU matmuls instead
    # of H per-head N=d_k matmuls.  K/V are recomputed per q-tile so the q-tile
    # axis can stay "parallel" (megacore) without cross-tile scratch deps.
    @pl.when(h == 0)
    def _():
        q_lin = jnp.dot(q_in[0].astype(jnp.bfloat16), wq[...],
                        preferred_element_type=jnp.float32)
        qu_all[...] = (q_lin + bqu[...]).astype(jnp.bfloat16)   # scale folded in
        qv_all[...] = (q_lin + bqv[...]).astype(jnp.bfloat16)
        k_all[...] = (jnp.dot(k_in[0].astype(jnp.bfloat16), wk[...],
                              preferred_element_type=jnp.float32)
                      + bk[...]).astype(jnp.bfloat16)
        v_all[...] = (jnp.dot(v_in[0].astype(jnp.bfloat16), wv[...],
                              preferred_element_type=jnp.float32)
                      + bv[...]).astype(jnp.bfloat16)

    col = pl.multiple_of(h * d_k, d_k)
    q_u = qu_all[:, pl.ds(col, d_k)]          # (Tq, d_k) bf16
    q_v = qv_all[:, pl.ds(col, d_k)]          # (Tq, d_k) bf16
    k_h = k_all[:, pl.ds(col, d_k)]           # (T,  d_k) bf16
    v_h = v_all[:, pl.ds(col, d_k)]           # (T,  d_k) bf16
    p_h = p_ref[h]                            # (Wp, d_k) bf16, per-q-tile window

    # matrix_ac[i, j] = <q_i + u, k_j> / sqrt(d_k)   (scale pre-folded)
    ac = lax.dot_general(q_u, k_h, (((1,), (1,)), ((), ())),
                         preferred_element_type=jnp.float32)     # (Tq, T)
    # matrix_bd against the per-q-tile pre-rotated positional window.
    bd = lax.dot_general(q_v, p_h, (((1,), (1,)), ((), ())),
                         preferred_element_type=jnp.float32)     # (Tq, Wp)
    shifted = _rel_shift_rows(bd, t_len, use_strided_roll)       # (Tq, T)

    scores = ac + shifted
    pad = mask_in[0] == 0                                        # (1, T)
    scores = jnp.where(pad, neg_min, scores)
    m = jnp.max(scores, axis=-1, keepdims=True)
    e = jnp.exp(scores - m)
    s = jnp.sum(e, axis=-1, keepdims=True)
    attn = e * pl.reciprocal(s, approx=True)
    attn = jnp.where(pad, 0.0, attn)

    ctx = jnp.dot(attn.astype(jnp.bfloat16), v_h,
                  preferred_element_type=jnp.float32)            # (Tq, d_k)

    # Stage this head's context into lane-aligned columns of the (Tq, F) scratch;
    # the output projection runs once per (batch, q-tile) with a full-F contraction.
    ctx_all[:, pl.ds(col, d_k)] = ctx.astype(jnp.bfloat16)

    @pl.when(h == n_head - 1)
    def _():
        out_ref[0] = (jnp.dot(ctx_all[...], wo[...],
                              preferred_element_type=jnp.float32)
                      + bo[...]).astype(out_ref.dtype)


# ---------------------------------------------------------------------------
# Host-side packing (done once) + forward wrapper
# ---------------------------------------------------------------------------
def pack_params(params, n_head):
    """One-time packing: transpose to (in,out), fold 1/sqrt(d_k), cast to bf16."""
    n_feat = params["wq"].shape[0]
    d_k = n_feat // n_head
    scale = 1.0 / math.sqrt(d_k)

    def lin_w(w, s=1.0):                       # torch (out, in) -> (in, out)
        return (w.T * s).astype(jnp.bfloat16)

    pbu = params["pos_bias_u"].reshape(-1)     # (F,)  column order = h*d_k + c
    pbv = params["pos_bias_v"].reshape(-1)
    return dict(
        wq_t=lin_w(params["wq"], scale),
        bqu=((params["bq"] + pbu) * scale).reshape(1, n_feat).astype(jnp.float32),
        bqv=((params["bq"] + pbv) * scale).reshape(1, n_feat).astype(jnp.float32),
        wk_t=lin_w(params["wk"]),
        bk=params["bk"].reshape(1, n_feat).astype(jnp.float32),
        wv_t=lin_w(params["wv"]),
        bv=params["bv"].reshape(1, n_feat).astype(jnp.float32),
        wp_t=params["wp"].T.astype(jnp.float32),          # pos projection in f32
        wo_t=params["wo"].T.astype(jnp.bfloat16),
        bo=params["bo"].reshape(1, n_feat).astype(jnp.float32),
    )


@functools.partial(jax.jit, static_argnames=("n_head", "q_tile", "use_strided_roll"))
def relpos_mha_forward(packed, query, key, value, pos_emb, mask, *, n_head,
                       q_tile=None, use_strided_roll=True):
    B, T, F = query.shape
    assert F % n_head == 0
    d_k = F // n_head
    P = pos_emb.shape[1]
    assert P == 2 * T - 1, "pos_emb must have length 2*time1-1"
    assert pos_emb.shape[0] == 1, "n_batch_pos == 1 assumed"
    assert mask.shape == (B, 1, T), "only (batch, 1, time2) masks supported"

    if q_tile is None:
        q_tile = T
        for cand in (256, 128, 64, 32, 16, 8):
            if cand <= T and T % cand == 0:
                q_tile = cand
                break
    Tq = q_tile
    assert T % Tq == 0 and (Tq % 8 == 0 or Tq == T)
    n_qt = T // Tq
    L = T + Tq - 1
    Wp = _round_up(L, 128)

    # Batch-invariant positional projection hoisted to XLA, then windowed and
    # pre-rotated per q-tile so the in-kernel rel_shift is a static "rotate row
    # r right by r lanes" and the BD matmul is (Tq, Wp~T+Tq-1) not (Tq, 2T-1).
    p_proj = jnp.dot(pos_emb[0], packed["wp_t"]).reshape(P, n_head, d_k)
    tiles = []
    for qt in range(n_qt):
        a = T - Tq - qt * Tq                   # window start for this q-tile
        win = jnp.pad(p_proj[a:a + L], ((0, Wp - L), (0, 0), (0, 0)))
        tiles.append(jnp.roll(win, -(Tq - 1), axis=0))
    p_tiled = (jnp.stack(tiles, 0).transpose(0, 2, 1, 3)
               .reshape(n_qt * n_head, Wp, d_k).astype(jnp.bfloat16))

    mask_i = mask.astype(jnp.int32)

    kernel = functools.partial(
        _relpos_mha_kernel, n_head=n_head, d_k=d_k, t_len=T,
        use_strided_roll=use_strided_roll)

    def const2(shape):                         # resident (never re-DMA'd) params
        return pl.BlockSpec(shape, lambda b, qt, h: (0, 0))

    grid_spec = pltpu.PrefetchScalarGridSpec(
        num_scalar_prefetch=0,
        grid=(B, n_qt, n_head),
        in_specs=[
            pl.BlockSpec((1, Tq, F), lambda b, qt, h: (b, qt, 0)),       # query f32
            pl.BlockSpec((1, T, F), lambda b, qt, h: (b, 0, 0)),         # key   f32
            pl.BlockSpec((1, T, F), lambda b, qt, h: (b, 0, 0)),         # value f32
            pl.BlockSpec((1, 1, T), lambda b, qt, h: (b, 0, 0)),         # mask  i32
            pl.BlockSpec((n_head, Wp, d_k), lambda b, qt, h: (qt, 0, 0)),  # pos table
            const2((F, F)), const2((1, F)), const2((1, F)),              # wq, bqu, bqv
            const2((F, F)), const2((1, F)),                              # wk, bk
            const2((F, F)), const2((1, F)),                              # wv, bv
            const2((F, F)), const2((1, F)),                              # wo, bo
        ],
        out_specs=pl.BlockSpec((1, Tq, F), lambda b, qt, h: (b, qt, 0)),
        scratch_shapes=[
            pltpu.VMEM((Tq, F), jnp.bfloat16),   # q + u (scaled)
            pltpu.VMEM((Tq, F), jnp.bfloat16),   # q + v (scaled)
            pltpu.VMEM((T, F), jnp.bfloat16),    # projected keys
            pltpu.VMEM((T, F), jnp.bfloat16),    # projected values
            pltpu.VMEM((Tq, F), jnp.bfloat16),   # per-head contexts
        ],
    )

    flops = (2 * B * T * F * F                  # Q projection
             + 4 * B * n_qt * T * F * F         # K, V projections (per q-tile)
             + 2 * B * T * T * F                # matrix_ac
             + 2 * B * n_qt * Tq * Wp * F       # matrix_bd
             + 2 * B * T * T * F                # attn @ v
             + 2 * B * T * F * F)               # output projection
    bytes_accessed = (3 * B * T * F * 4 + B * T * 4
                      + 4 * F * F * 2 + 5 * F * 4
                      + n_qt * n_head * Wp * d_k * 2
                      + B * T * F * 2)
    cost = pl.CostEstimate(flops=flops,
                           transcendentals=B * n_head * T * T,
                           bytes_accessed=bytes_accessed)

    return pl.pallas_call(
        kernel,
        out_shape=jax.ShapeDtypeStruct((B, T, F), jnp.bfloat16),
        grid_spec=grid_spec,
        compiler_params=pltpu.CompilerParams(
            dimension_semantics=("parallel", "parallel", "arbitrary"),
            vmem_limit_bytes=_pick_vmem_limit(),
        ),
        cost_estimate=cost,
    )(query, key, value, mask_i, p_tiled,
      packed["wq_t"], packed["bqu"], packed["bqv"],
      packed["wk_t"], packed["bk"], packed["wv_t"], packed["bv"],
      packed["wo_t"], packed["bo"])


# ---------------------------------------------------------------------------
# Pure-JAX reference (mirrors the PyTorch forward, eval mode, f32)
# ---------------------------------------------------------------------------
def ref_forward(params, query, key, value, pos_emb, mask, *, n_head):
    B, T, F = query.shape
    d_k = F // n_head

    def lin(x, w, b=None):
        y = x @ w.T
        return y + b if b is not None else y

    q = lin(query, params["wq"], params["bq"]).reshape(B, T, n_head, d_k)
    k = lin(key, params["wk"], params["bk"]).reshape(B, T, n_head, d_k).transpose(0, 2, 1, 3)
    v = lin(value, params["wv"], params["bv"]).reshape(B, T, n_head, d_k).transpose(0, 2, 1, 3)
    p = lin(pos_emb, params["wp"]).reshape(1, -1, n_head, d_k).transpose(0, 2, 1, 3)

    q_u = (q + params["pos_bias_u"]).transpose(0, 2, 1, 3)   # (B,H,T,dk)
    q_v = (q + params["pos_bias_v"]).transpose(0, 2, 1, 3)

    ac = jnp.einsum("bhtd,bhsd->bhts", q_u, k)
    bd = jnp.einsum("bhtd,xhpd->bhtp", q_v, p)
    idx = jnp.arange(T)[None, :] - jnp.arange(T)[:, None] + T - 1   # (T, T)
    bd_shift = jnp.take_along_axis(bd, idx[None, None], axis=-1)

    scores = (ac + bd_shift) / math.sqrt(d_k)
    pad = mask[:, None] == 0                                        # (B,1,1,T)
    neg_min = float(np.finfo(np.float32).min)
    scores = jnp.where(pad, neg_min, scores)
    attn = jax.nn.softmax(scores, axis=-1)
    attn = jnp.where(pad, 0.0, attn)
    ctx = jnp.einsum("bhts,bhsd->bhtd", attn, v)
    ctx = ctx.transpose(0, 2, 1, 3).reshape(B, T, F)
    return lin(ctx, params["wo"], params["bo"])


def init_params(key, n_head, n_feat):
    d_k = n_feat // n_head
    ks = jax.random.split(key, 11)
    s = 1.0 / math.sqrt(n_feat)
    xb = math.sqrt(6.0 / (n_head + d_k))

    def w(k):
        return jax.random.uniform(k, (n_feat, n_feat), jnp.float32, -s, s)

    def b(k):
        return jax.random.uniform(k, (n_feat,), jnp.float32, -s, s)

    return dict(
        wq=w(ks[0]), bq=b(ks[1]),
        wk=w(ks[2]), bk=b(ks[3]),
        wv=w(ks[4]), bv=b(ks[5]),
        wp=w(ks[6]),
        wo=w(ks[7]), bo=b(ks[8]),
        pos_bias_u=jax.random.uniform(ks[9], (n_head, d_k), jnp.float32, -xb, xb),
        pos_bias_v=jax.random.uniform(ks[10], (n_head, d_k), jnp.float32, -xb, xb),
    )


if __name__ == "__main__":
    B, T, H, D_K = 2, 16, 2, 128          # lane-dense toy shapes: F = 256, d_k = 128
    F = H * D_K
    P = 2 * T - 1

    root = jax.random.PRNGKey(0)
    kp, kq, kk, kv, kpos = jax.random.split(root, 5)
    params = init_params(kp, H, F)

    query = jax.random.normal(kq, (B, T, F), jnp.float32)
    key = jax.random.normal(kk, (B, T, F), jnp.float32)
    value = jax.random.normal(kv, (B, T, F), jnp.float32)
    pos_emb = jax.random.normal(kpos, (1, P, F), jnp.float32)
    mask = jnp.ones((B, 1, T), jnp.int32).at[1, :, 12:].set(0)   # pad tail of batch 1

    use_roll = _strided_roll_matches_numpy()
    packed = pack_params(params, H)

    # q_tile=8 -> 2 query tiles, exercising the flash-style tiled path.
    out = relpos_mha_forward(packed, query, key, value, pos_emb, mask,
                             n_head=H, q_tile=8, use_strided_roll=use_roll)
    out = jax.block_until_ready(out)

    ref = ref_forward(params, query, key, value, pos_emb, mask, n_head=H)
    assert out.shape == (B, T, F) and out.dtype == jnp.bfloat16
    if not bool(jnp.allclose(out.astype(jnp.float32), ref, atol=3e-2, rtol=3e-2)):
        raise AssertionError("Pallas kernel output does not match JAX reference")

    print("KERNEL_OK")
</pallas_src>

<mosaic_0001>
module attributes {stable_mosaic.version = 11 : i64} {
  func.func @k(%arg0: memref<8x128xf32, #tpu.memory_space<vmem>>, %arg1: memref<8x128xf32, #tpu.memory_space<vmem>>) attributes {dimension_semantics = [], scalar_prefetch = 0 : i64, scratch_operands = 0 : i64, tpu.core_type = #tpu.core_type<tc>} {
    %c0 = arith.constant 0 : index
    %c0_0 = arith.constant 0 : index
    %0 = vector.load %arg0[%c0, %c0_0] : memref<8x128xf32, #tpu.memory_space<vmem>>, vector<8x128xf32>
    %c0_i32 = arith.constant 0 : i32
    %1 = tpu.dynamic_rotate %0 by %c0_i32 dim 1 {stride = 1 : si32, stride_dimension = 0 : si32} : vector<8x128xf32>, i32 -> vector<8x128xf32>
    %c0_1 = arith.constant 0 : index
    %c0_2 = arith.constant 0 : index
    %2 = vector.load %arg1[%c0_1, %c0_2] : memref<8x128xf32, #tpu.memory_space<vmem>>, vector<8x128xf32>
    tpu.vector_store %arg1[%c0_1, %c0_2], %1 {strides = array<i32>} : memref<8x128xf32, #tpu.memory_space<vmem>>, vector<8x128xf32>,
    return
  }
}

module attributes {stable_mosaic.version = 11 : i64} {
  func.func @_relpos_mha_kernel(%arg0: i32, %arg1: i32, %arg2: i32, %arg3: memref<1x8x256xf32, #tpu.memory_space<vmem>>, %arg4: memref<1x16x256xf32, #tpu.memory_space<vmem>>, %arg5: memref<1x16x256xf32, #tpu.memory_space<vmem>>, %arg6: memref<1x1x16xi32, #tpu.memory_space<vmem>>, %arg7: memref<2x128x128xbf16, #tpu.memory_space<vmem>>, %arg8: memref<256x256xbf16, #tpu.memory_space<vmem>>, %arg9: memref<1x256xf32, #tpu.memory_space<vmem>>, %arg10: memref<1x256xf32, #tpu.memory_space<vmem>>, %arg11: memref<256x256xbf16, #tpu.memory_space<vmem>>, %arg12: memref<1x256xf32, #tpu.memory_space<vmem>>, %arg13: memref<256x256xbf16, #tpu.memory_space<vmem>>, %arg14: memref<1x256xf32, #tpu.memory_space<vmem>>, %arg15: memref<256x256xbf16, #tpu.memory_space<vmem>>, %arg16: memref<1x256xf32, #tpu.memory_space<vmem>>, %arg17: memref<1x8x256xbf16, #tpu.memory_space<vmem>>, %arg18: memref<8x256xbf16, #tpu.memory_space<vmem>>, %arg19: memref<8x256xbf16, #tpu.memory_space<vmem>>, %arg20: memref<16x256xbf16, #tpu.memory_space<vmem>>, %arg21: memref<16x256xbf16, #tpu.memory_space<vmem>>, %arg22: memref<8x256xbf16, #tpu.memory_space<vmem>>) attributes {dimension_semantics = [#tpu.dimension_semantics<parallel>, #tpu.dimension_semantics<parallel>, #tpu.dimension_semantics<arbitrary>], iteration_bounds = array<i64: 2, 2, 2>, scalar_prefetch = 0 : i64, scratch_operands = 5 : i64, tpu.core_type = #tpu.core_type<tc>, window_params = [{transform_indices = @transform_0, window_bounds = array<i64: 1, 8, 256>}, {transform_indices = @transform_1, window_bounds = array<i64: 1, 16, 256>}, {transform_indices = @transform_2, window_bounds = array<i64: 1, 16, 256>}, {transform_indices = @transform_3, window_bounds = array<i64: 1, 1, 16>}, {transform_indices = @transform_4, window_bounds = array<i64: 2, 128, 128>}, {pipeline_mode = #tpu.pipeline_mode<synchronous>, transform_indices = @transform_5, window_bounds = array<i64: 256, 256>}, {pipeline_mode = #tpu.pipeline_mode<synchronous>, transform_indices = @transform_6, window_bounds = array<i64: 1, 256>}, {pipeline_mode = #tpu.pipeline_mode<synchronous>, transform_indices = @transform_7, window_bounds = array<i64: 1, 256>}, {pipeline_mode = #tpu.pipeline_mode<synchronous>, transform_indices = @transform_8, window_bounds = array<i64: 256, 256>}, {pipeline_mode = #tpu.pipeline_mode<synchronous>, transform_indices = @transform_9, window_bounds = array<i64: 1, 256>}, {pipeline_mode = #tpu.pipeline_mode<synchronous>, transform_indices = @transform_10, window_bounds = array<i64: 256, 256>}, {pipeline_mode = #tpu.pipeline_mode<synchronous>, transform_indices = @transform_11, window_bounds = array<i64: 1, 256>}, {pipeline_mode = #tpu.pipeline_mode<synchronous>, transform_indices = @transform_12, window_bounds = array<i64: 256, 256>}, {pipeline_mode = #tpu.pipeline_mode<synchronous>, transform_indices = @transform_13, window_bounds = array<i64: 1, 256>}, {transform_indices = @transform_14, window_bounds = array<i64: 1, 8, 256>}]} {
    %c0_i32 = arith.constant 0 : i32
    %0 = arith.cmpi eq, %arg2, %c0_i32 : i32
    %1 = arith.extui %0 : i1 to i32
    %c0_i32_0 = arith.constant 0 : i32
    %2 = arith.cmpi ne, %1, %c0_i32_0 : i32
    scf.if %2 {
      %c0_22 = arith.constant 0 : index
      %c0_23 = arith.constant 0 : index
      %c0_24 = arith.constant 0 : index
      %81 = vector.load %arg3[%c0_22, %c0_23, %c0_24] : memref<1x8x256xf32, #tpu.memory_space<vmem>>, vector<1x8x256xf32>
      %82 = vector.shape_cast %81 : vector<1x8x256xf32> to vector<8x256xf32>
      %83 = arith.truncf %82 : vector<8x256xf32> to vector<8x256xbf16>
      %c0_25 = arith.constant 0 : index
      %c0_26 = arith.constant 0 : index
      %84 = vector.load %arg8[%c0_25, %c0_26] : memref<256x256xbf16, #tpu.memory_space<vmem>>, vector<256x256xbf16>
      %cst_27 = arith.constant dense<0.000000e+00> : vector<8x256xf32>
      %85 = tpu.matmul %83, %84, %cst_27 {dimension_numbers = #tpu.dot_dimension_numbers<[1], [0], [0], [1], [0, 0, 1, 1], [], []>} : vector<8x256xbf16>, vector<256x256xbf16>, vector<8x256xf32> -> vector<8x256xf32>
      %c0_28 = arith.constant 0 : index
      %c0_29 = arith.constant 0 : index
      %86 = vector.load %arg9[%c0_28, %c0_29] : memref<1x256xf32, #tpu.memory_space<vmem>>, vector<1x256xf32>
      %87 = vector.broadcast %86 : vector<1x256xf32> to vector<8x256xf32>
      %88 = arith.addf %85, %87 : vector<8x256xf32>
      %89 = arith.truncf %88 : vector<8x256xf32> to vector<8x256xbf16>
      %c0_30 = arith.constant 0 : index
      %c0_31 = arith.constant 0 : index
      %90 = vector.load %arg18[%c0_30, %c0_31] : memref<8x256xbf16, #tpu.memory_space<vmem>>, vector<8x256xbf16>
      tpu.vector_store %arg18[%c0_30, %c0_31], %89 {strides = array<i32>} : memref<8x256xbf16, #tpu.memory_space<vmem>>, vector<8x256xbf16>,
      %c0_32 = arith.constant 0 : index
      %c0_33 = arith.constant 0 : index
      %91 = vector.load %arg10[%c0_32, %c0_33] : memref<1x256xf32, #tpu.memory_space<vmem>>, vector<1x256xf32>
      %92 = vector.broadcast %91 : vector<1x256xf32> to vector<8x256xf32>
      %93 = arith.addf %85, %92 : vector<8x256xf32>
      %94 = arith.truncf %93 : vector<8x256xf32> to vector<8x256xbf16>
      %c0_34 = arith.constant 0 : index
      %c0_35 = arith.constant 0 : index
      %95 = vector.load %arg19[%c0_34, %c0_35] : memref<8x256xbf16, #tpu.memory_space<vmem>>, vector<8x256xbf16>
      tpu.vector_store %arg19[%c0_34, %c0_35], %94 {strides = array<i32>} : memref<8x256xbf16, #tpu.memory_space<vmem>>, vector<8x256xbf16>,
      %c0_36 = arith.constant 0 : index
      %c0_37 = arith.constant 0 : index
      %c0_38 = arith.constant 0 : index
      %96 = vector.load %arg4[%c0_36, %c0_37, %c0_38] : memref<1x16x256xf32, #tpu.memory_space<vmem>>, vector<1x16x256xf32>
      %97 = vector.shape_cast %96 : vector<1x16x256xf32> to vector<16x256xf32>
      %98 = arith.truncf %97 : vector<16x256xf32> to vector<16x256xbf16>
      %c0_39 = arith.constant 0 : index
      %c0_40 = arith.constant 0 : index
      %99 = vector.load %arg11[%c0_39, %c0_40] : memref<256x256xbf16, #tpu.memory_space<vmem>>, vector<256x256xbf16>
      %cst_41 = arith.constant dense<0.000000e+00> : vector<16x256xf32>
      %100 = tpu.matmul %98, %99, %cst_41 {dimension_numbers = #tpu.dot_dimension_numbers<[1], [0], [0], [1], [0, 0, 1, 1], [], []>} : vector<16x256xbf16>, vector<256x256xbf16>, vector<16x256xf32> -> vector<16x256xf32>
      %c0_42 = arith.constant 0 : index
      %c0_43 = arith.constant 0 : index
      %101 = vector.load %arg12[%c0_42, %c0_43] : memref<1x256xf32, #tpu.memory_space<vmem>>, vector<1x256xf32>
      %102 = vector.broadcast %101 : vector<1x256xf32> to vector<16x256xf32>
      %103 = arith.addf %100, %102 : vector<16x256xf32>
      %104 = arith.truncf %103 : vector<16x256xf32> to vector<16x256xbf16>
      %c0_44 = arith.constant 0 : index
      %c0_45 = arith.constant 0 : index
      %105 = vector.load %arg20[%c0_44, %c0_45] : memref<16x256xbf16, #tpu.memory_space<vmem>>, vector<16x256xbf16>
      tpu.vector_store %arg20[%c0_44, %c0_45], %104 {strides = array<i32>} : memref<16x256xbf16, #tpu.memory_space<vmem>>, vector<16x256xbf16>,
      %c0_46 = arith.constant 0 : index
      %c0_47 = arith.constant 0 : index
      %c0_48 = arith.constant 0 : index
      %106 = vector.load %arg5[%c0_46, %c0_47, %c0_48] : memref<1x16x256xf32, #tpu.memory_space<vmem>>, vector<1x16x256xf32>
      %107 = vector.shape_cast %106 : vector<1x16x256xf32> to vector<16x256xf32>
      %108 = arith.truncf %107 : vector<16x256xf32> to vector<16x256xbf16>
      %c0_49 = arith.constant 0 : index
      %c0_50 = arith.constant 0 : index
      %109 = vector.load %arg13[%c0_49, %c0_50] : memref<256x256xbf16, #tpu.memory_space<vmem>>, vector<256x256xbf16>
      %cst_51 = arith.constant dense<0.000000e+00> : vector<16x256xf32>
      %110 = tpu.matmul %108, %109, %cst_51 {dimension_numbers = #tpu.dot_dimension_numbers<[1], [0], [0], [1], [0, 0, 1, 1], [], []>} : vector<16x256xbf16>, vector<256x256xbf16>, vector<16x256xf32> -> vector<16x256xf32>
      %c0_52 = arith.constant 0 : index
      %c0_53 = arith.constant 0 : index
      %111 = vector.load %arg14[%c0_52, %c0_53] : memref<1x256xf32, #tpu.memory_space<vmem>>, vector<1x256xf32>
      %112 = vector.broadcast %111 : vector<1x256xf32> to vector<16x256xf32>
      %113 = arith.addf %110, %112 : vector<16x256xf32>
      %114 = arith.truncf %113 : vector<16x256xf32> to vector<16x256xbf16>
      %c0_54 = arith.constant 0 : index
      %c0_55 = arith.constant 0 : index
      %115 = vector.load %arg21[%c0_54, %c0_55] : memref<16x256xbf16, #tpu.memory_space<vmem>>, vector<16x256xbf16>
      tpu.vector_store %arg21[%c0_54, %c0_55], %114 {strides = array<i32>} : memref<16x256xbf16, #tpu.memory_space<vmem>>, vector<16x256xbf16>,
    } else {
    }
    %c128_i32 = arith.constant 128 : i32
    %3 = arith.muli %arg2, %c128_i32 : i32
    %4 = tpu.assume_multiple %3, 128 : i32
    %c0 = arith.constant 0 : index
    %5 = arith.index_cast %4 : i32 to index
    %6 = vector.load %arg18[%c0, %5] : memref<8x256xbf16, #tpu.memory_space<vmem>>, vector<8x128xbf16>
    %c0_1 = arith.constant 0 : index
    %7 = arith.index_cast %4 : i32 to index
    %8 = vector.load %arg19[%c0_1, %7] : memref<8x256xbf16, #tpu.memory_space<vmem>>, vector<8x128xbf16>
    %c0_2 = arith.constant 0 : index
    %9 = arith.index_cast %4 : i32 to index
    %10 = vector.load %arg20[%c0_2, %9] : memref<16x256xbf16, #tpu.memory_space<vmem>>, vector<16x128xbf16>
    %c0_3 = arith.constant 0 : index
    %11 = arith.index_cast %4 : i32 to index
    %12 = vector.load %arg21[%c0_3, %11] : memref<16x256xbf16, #tpu.memory_space<vmem>>, vector<16x128xbf16>
    %13 = arith.index_cast %arg2 : i32 to index
    %c0_4 = arith.constant 0 : index
    %c0_5 = arith.constant 0 : index
    %14 = vector.load %arg7[%13, %c0_4, %c0_5] : memref<2x128x128xbf16, #tpu.memory_space<vmem>>, vector<1x128x128xbf16>
    %15 = vector.shape_cast %14 : vector<1x128x128xbf16> to vector<128x128xbf16>
    %cst = arith.constant dense<0.000000e+00> : vector<8x16xf32>
    %16 = tpu.matmul %6, %10, %cst {dimension_numbers = #tpu.dot_dimension_numbers<[1], [1], [0], [0], [0, 0, 1, 0], [], []>} : vector<8x128xbf16>, vector<16x128xbf16>, vector<8x16xf32> -> vector<8x16xf32>
    %cst_6 = arith.constant dense<0.000000e+00> : vector<8x128xf32>
    %17 = tpu.matmul %8, %15, %cst_6 {dimension_numbers = #tpu.dot_dimension_numbers<[1], [1], [0], [0], [0, 0, 1, 0], [], []>} : vector<8x128xbf16>, vector<128x128xbf16>, vector<8x128xf32> -> vector<8x128xf32>
    %18 = tpu.iota {dimensions = array<i32: 0>} : vector<8x1xi32>
    %19 = vector.extract_strided_slice %17 {offsets = [0, 127], sizes = [8, 1], strides = [1, 1]} : vector<8x128xf32> to vector<8x1xf32>
    %20 = vector.extract_strided_slice %17 {offsets = [0, 0], sizes = [8, 127], strides = [1, 1]} : vector<8x128xf32> to vector<8x127xf32>
    %21 = tpu.concatenate %19, %20 in 1 : vector<8x1xf32>, vector<8x127xf32> -> vector<8x128xf32>
    %c1_i32 = arith.constant 1 : i32
    %22 = vector.broadcast %c1_i32 : i32 to vector<8x1xi32>
    %23 = arith.andi %18, %22 : vector<8x1xi32>
    %c0_i32_7 = arith.constant 0 : i32
    %24 = vector.broadcast %c0_i32_7 : i32 to vector<8x1xi32>
    %25 = arith.cmpi ne, %23, %24 : vector<8x1xi32>
    %26 = vector.shape_cast %25 : vector<8x1xi1> to vector<8x1xi1>
    %27 = vector.broadcast %26 : vector<8x1xi1> to vector<8x128xi1>
    %28 = arith.select %27, %21, %17 : vector<8x128xi1>, vector<8x128xf32>
    %29 = vector.extract_strided_slice %28 {offsets = [0, 126], sizes = [8, 2], strides = [1, 1]} : vector<8x128xf32> to vector<8x2xf32>
    %30 = vector.extract_strided_slice %28 {offsets = [0, 0], sizes = [8, 126], strides = [1, 1]} : vector<8x128xf32> to vector<8x126xf32>
    %31 = tpu.concatenate %29, %30 in 1 : vector<8x2xf32>, vector<8x126xf32> -> vector<8x128xf32>
    %c2_i32 = arith.constant 2 : i32
    %32 = vector.broadcast %c2_i32 : i32 to vector<8x1xi32>
    %33 = arith.andi %18, %32 : vector<8x1xi32>
    %c0_i32_8 = arith.constant 0 : i32
    %34 = vector.broadcast %c0_i32_8 : i32 to vector<8x1xi32>
    %35 = arith.cmpi ne, %33, %34 : vector<8x1xi32>
    %36 = vector.shape_cast %35 : vector<8x1xi1> to vector<8x1xi1>
    %37 = vector.broadcast %36 : vector<8x1xi1> to vector<8x128xi1>
    %38 = arith.select %37, %31, %28 : vector<8x128xi1>, vector<8x128xf32>
    %39 = vector.extract_strided_slice %38 {offsets = [0, 124], sizes = [8, 4], strides = [1, 1]} : vector<8x128xf32> to vector<8x4xf32>
    %40 = vector.extract_strided_slice %38 {offsets = [0, 0], sizes = [8, 124], strides = [1, 1]} : vector<8x128xf32> to vector<8x124xf32>
    %41 = tpu.concatenate %39, %40 in 1 : vector<8x4xf32>, vector<8x124xf32> -> vector<8x128xf32>
    %c4_i32 = arith.constant 4 : i32
    %42 = vector.broadcast %c4_i32 : i32 to vector<8x1xi32>
    %43 = arith.andi %18, %42 : vector<8x1xi32>
    %c0_i32_9 = arith.constant 0 : i32
    %44 = vector.broadcast %c0_i32_9 : i32 to vector<8x1xi32>
    %45 = arith.cmpi ne, %43, %44 : vector<8x1xi32>
    %46 = vector.shape_cast %45 : vector<8x1xi1> to vector<8x1xi1>
    %47 = vector.broadcast %46 : vector<8x1xi1> to vector<8x128xi1>
    %48 = arith.select %47, %41, %38 : vector<8x128xi1>, vector<8x128xf32>
    %49 = vector.extract_strided_slice %48 {offsets = [0, 0], sizes = [8, 16], strides = [1, 1]} : vector<8x128xf32> to vector<8x16xf32>
    %50 = arith.addf %16, %49 : vector<8x16xf32>
    %c0_10 = arith.constant 0 : index
    %c0_11 = arith.constant 0 : index
    %c0_12 = arith.constant 0 : index
    %51 = vector.load %arg6[%c0_10, %c0_11, %c0_12] : memref<1x1x16xi32, #tpu.memory_space<vmem>>, vector<1x1x16xi32>
    %52 = vector.shape_cast %51 : vector<1x1x16xi32> to vector<1x16xi32>
    %c0_i32_13 = arith.constant 0 : i32
    %53 = vector.broadcast %c0_i32_13 : i32 to vector<1x16xi32>
    %54 = arith.cmpi eq, %52, %53 : vector<1x16xi32>
    %cst_14 = arith.constant -3.40282347E+38 : f32
    %55 = vector.shape_cast %54 : vector<1x16xi1> to vector<1x16xi1>
    %56 = vector.broadcast %55 : vector<1x16xi1> to vector<8x16xi1>
    %57 = vector.broadcast %cst_14 : f32 to vector<8x16xf32>
    %58 = arith.select %56, %57, %50 : vector<8x16xi1>, vector<8x16xf32>
    %cst_15 = arith.constant dense<0xFF800000> : vector<8xf32>
    %59 = vector.multi_reduction <maximumf>, %58, %cst_15 [1] : vector<8x16xf32> to vector<8xf32>
    %60 = vector.shape_cast %59 : vector<8xf32> to vector<8x1xf32>
    %61 = vector.broadcast %60 : vector<8x1xf32> to vector<8x16xf32>
    %62 = arith.subf %58, %61 : vector<8x16xf32>
    %63 = math.exp %62 : vector<8x16xf32>
    %cst_16 = arith.constant dense<0.000000e+00> : vector<8xf32>
    %64 = vector.multi_reduction <add>, %63, %cst_16 [1] : vector<8x16xf32> to vector<8xf32>
    %65 = vector.shape_cast %64 : vector<8xf32> to vector<8x1xf32>
    %66 = tpu.reciprocal %65 {approx = true} : vector<8x1xf32> -> vector<8x1xf32>
    %67 = vector.broadcast %66 : vector<8x1xf32> to vector<8x16xf32>
    %68 = arith.mulf %63, %67 : vector<8x16xf32>
    %cst_17 = arith.constant 0.000000e+00 : f32
    %69 = vector.shape_cast %54 : vector<1x16xi1> to vector<1x16xi1>
    %70 = vector.broadcast %69 : vector<1x16xi1> to vector<8x16xi1>
    %71 = vector.broadcast %cst_17 : f32 to vector<8x16xf32>
    %72 = arith.select %70, %71, %68 : vector<8x16xi1>, vector<8x16xf32>
    %73 = arith.truncf %72 : vector<8x16xf32> to vector<8x16xbf16>
    %cst_18 = arith.constant dense<0.000000e+00> : vector<8x128xf32>
    %74 = tpu.matmul %73, %12, %cst_18 {dimension_numbers = #tpu.dot_dimension_numbers<[1], [0], [0], [1], [0, 0, 1, 1], [], []>} : vector<8x16xbf16>, vector<16x128xbf16>, vector<8x128xf32> -> vector<8x128xf32>
    %75 = arith.truncf %74 : vector<8x128xf32> to vector<8x128xbf16>
    %c0_19 = arith.constant 0 : index
    %76 = arith.index_cast %4 : i32 to index
    %77 = vector.load %arg22[%c0_19, %76] : memref<8x256xbf16, #tpu.memory_space<vmem>>, vector<8x128xbf16>
    tpu.vector_store %arg22[%c0_19, %76], %75 {strides = array<i32>} : memref<8x256xbf16, #tpu.memory_space<vmem>>, vector<8x128xbf16>,
    %c1_i32_20 = arith.constant 1 : i32
    %78 = arith.cmpi eq, %arg2, %c1_i32_20 : i32
    %79 = arith.extui %78 : i1 to i32
    %c0_i32_21 = arith.constant 0 : i32
    %80 = arith.cmpi ne, %79, %c0_i32_21 : i32
    scf.if %80 {
      %c0_22 = arith.constant 0 : index
      %c0_23 = arith.constant 0 : index
      %81 = vector.load %arg22[%c0_22, %c0_23] : memref<8x256xbf16, #tpu.memory_space<vmem>>, vector<8x256xbf16>
      %c0_24 = arith.constant 0 : index
      %c0_25 = arith.constant 0 : index
      %82 = vector.load %arg15[%c0_24, %c0_25] : memref<256x256xbf16, #tpu.memory_space<vmem>>, vector<256x256xbf16>
      %cst_26 = arith.constant dense<0.000000e+00> : vector<8x256xf32>
      %83 = tpu.matmul %81, %82, %cst_26 {dimension_numbers = #tpu.dot_dimension_numbers<[1], [0], [0], [1], [0, 0, 1, 1], [], []>} : vector<8x256xbf16>, vector<256x256xbf16>, vector<8x256xf32> -> vector<8x256xf32>
      %c0_27 = arith.constant 0 : index
      %c0_28 = arith.constant 0 : index
      %84 = vector.load %arg16[%c0_27, %c0_28] : memref<1x256xf32, #tpu.memory_space<vmem>>, vector<1x256xf32>
      %85 = vector.broadcast %84 : vector<1x256xf32> to vector<8x256xf32>
      %86 = arith.addf %83, %85 : vector<8x256xf32>
      %87 = arith.truncf %86 : vector<8x256xf32> to vector<8x256xbf16>
      %c0_29 = arith.constant 0 : index
      %c0_30 = arith.constant 0 : index
      %c0_31 = arith.constant 0 : index
      %88 = vector.load %arg17[%c0_29, %c0_30, %c0_31] : memref<1x8x256xbf16, #tpu.memory_space<vmem>>, vector<1x8x256xbf16>
      %89 = vector.shape_cast %88 : vector<1x8x256xbf16> to vector<8x256xbf16>
      %90 = vector.shape_cast %87 : vector<8x256xbf16> to vector<1x8x256xbf16>
      tpu.vector_store %arg17[%c0_29, %c0_30, %c0_31], %90 {strides = array<i32>} : memref<1x8x256xbf16, #tpu.memory_space<vmem>>, vector<1x8x256xbf16>,
    } else {
    }
    return
  }
  func.func @transform_0(%arg0: i32, %arg1: i32, %arg2: i32) -> (i32, i32, i32) {
    %c0_i32 = arith.constant 0 : i32
    %c0_i32_0 = arith.constant 0 : i32
    return %arg0, %arg1, %c0_i32 : i32, i32, i32
  }
  func.func @transform_1(%arg0: i32, %arg1: i32, %arg2: i32) -> (i32, i32, i32) {
    %c0_i32 = arith.constant 0 : i32
    %c0_i32_0 = arith.constant 0 : i32
    %c0_i32_1 = arith.constant 0 : i32
    return %arg0, %c0_i32, %c0_i32_0 : i32, i32, i32
  }
  func.func @transform_2(%arg0: i32, %arg1: i32, %arg2: i32) -> (i32, i32, i32) {
    %c0_i32 = arith.constant 0 : i32
    %c0_i32_0 = arith.constant 0 : i32
    %c0_i32_1 = arith.constant 0 : i32
    return %arg0, %c0_i32, %c0_i32_0 : i32, i32, i32
  }
  func.func @transform_3(%arg0: i32, %arg1: i32, %arg2: i32) -> (i32, i32, i32) {
    %c0_i32 = arith.constant 0 : i32
    %c0_i32_0 = arith.constant 0 : i32
    %c0_i32_1 = arith.constant 0 : i32
    return %arg0, %c0_i32, %c0_i32_0 : i32, i32, i32
  }
  func.func @transform_4(%arg0: i32, %arg1: i32, %arg2: i32) -> (i32, i32, i32) {
    %c0_i32 = arith.constant 0 : i32
    %c0_i32_0 = arith.constant 0 : i32
    %c0_i32_1 = arith.constant 0 : i32
    return %arg1, %c0_i32, %c0_i32_0 : i32, i32, i32
  }
  func.func @transform_5(%arg0: i32, %arg1: i32, %arg2: i32) -> (i32, i32) {
    %c0_i32 = arith.constant 0 : i32
    %c0_i32_0 = arith.constant 0 : i32
    %c0_i32_1 = arith.constant 0 : i32
    return %c0_i32, %c0_i32_0 : i32, i32
  }
  func.func @transform_6(%arg0: i32, %arg1: i32, %arg2: i32) -> (i32, i32) {
    %c0_i32 = arith.constant 0 : i32
    %c0_i32_0 = arith.constant 0 : i32
    %c0_i32_1 = arith.constant 0 : i32
    return %c0_i32, %c0_i32_0 : i32, i32
  }
  func.func @transform_7(%arg0: i32, %arg1: i32, %arg2: i32) -> (i32, i32) {
    %c0_i32 = arith.constant 0 : i32
    %c0_i32_0 = arith.constant 0 : i32
    %c0_i32_1 = arith.constant 0 : i32
    return %c0_i32, %c0_i32_0 : i32, i32
  }
  func.func @transform_8(%arg0: i32, %arg1: i32, %arg2: i32) -> (i32, i32) {
    %c0_i32 = arith.constant 0 : i32
    %c0_i32_0 = arith.constant 0 : i32
    %c0_i32_1 = arith.constant 0 : i32
    return %c0_i32, %c0_i32_0 : i32, i32
  }
  func.func @transform_9(%arg0: i32, %arg1: i32, %arg2: i32) -> (i32, i32) {
    %c0_i32 = arith.constant 0 : i32
    %c0_i32_0 = arith.constant 0 : i32
    %c0_i32_1 = arith.constant 0 : i32
    return %c0_i32, %c0_i32_0 : i32, i32
  }
  func.func @transform_10(%arg0: i32, %arg1: i32, %arg2: i32) -> (i32, i32) {
    %c0_i32 = arith.constant 0 : i32
    %c0_i32_0 = arith.constant 0 : i32
    %c0_i32_1 = arith.constant 0 : i32
    return %c0_i32, %c0_i32_0 : i32, i32
  }
  func.func @transform_11(%arg0: i32, %arg1: i32, %arg2: i32) -> (i32, i32) {
    %c0_i32 = arith.constant 0 : i32
    %c0_i32_0 = arith.constant 0 : i32
    %c0_i32_1 = arith.constant 0 : i32
    return %c0_i32, %c0_i32_0 : i32, i32
  }
  func.func @transform_12(%arg0: i32, %arg1: i32, %arg2: i32) -> (i32, i32) {
    %c0_i32 = arith.constant 0 : i32
    %c0_i32_0 = arith.constant 0 : i32
    %c0_i32_1 = arith.constant 0 : i32
    return %c0_i32, %c0_i32_0 : i32, i32
  }
  func.func @transform_13(%arg0: i32, %arg1: i32, %arg2: i32) -> (i32, i32) {
    %c0_i32 = arith.constant 0 : i32
    %c0_i32_0 = arith.constant 0 : i32
    %c0_i32_1 = arith.constant 0 : i32
    return %c0_i32, %c0_i32_0 : i32, i32
  }
  func.func @transform_14(%arg0: i32, %arg1: i32, %arg2: i32) -> (i32, i32, i32) {
    %c0_i32 = arith.constant 0 : i32
    %c0_i32_0 = arith.constant 0 : i32
    return %arg0, %arg1, %c0_i32 : i32, i32, i32
  }
}

</mosaic_0001>

<bundles_post_ra>
// kernel: tpu_custom_call.1
= control target key start
LH: loop header
LB: loop body
LE: loop exit
PB: predicated region body
PF: predicated region fallthrough
CT: control target
= control target key end

     0   :  { %6 = vsyncpa [#allocation3], 0  ;;  %s119_s0 = inlined_call_operand.hbm [shape: f32[8,128], index: 0, kind: input, shape index: {}]   ;;  %s120_s1 = inlined_call_operand.hbm [shape: f32[8,128], index: 1, kind: output, shape index: {}]  }
   0x1   :  { %7 = vsyncpa [#allocation4], 0  ;;  %s13_s8 = sshll.u32 %s119_s0, 4  ;;  %s100_s9 = smov [#allocation2]   ;;  %s14_s8 = int_to_ptr.hbm [resolvable:$true] %s13_s8 }
   0x2   :  { %s15_s10 = sshll.u32 %s100_s9, 4  ;;  %s16_s10 = int_to_ptr.vmem [resolvable:$true] %s15_s10 }
   0x3   :  { %18 = dma.hbm_to_vmem [thread:$0]  %s14_s8, 128, %s16_s10, [#allocation3]  }
   0x4   :  { %96 = dma.done.wait [#allocation3], 128  }
   0x5   :  { %97 = vsyncadd [#allocation3], 4294967168  ;;  %v23_v0 = vld [vmem:[#allocation2] sm:$0xff]  ;;  %s101_s11 = smov 256   ;;  %s102_s12 = smov [#allocation5]  }
   0x6   :  { %25 = vrot.lane.b32.xlu0 %v23_v0, %s101_s11  ;;  %s33_s13 = sshll.u32 %s102_s12, 4  ;;  %s35_s16 = sshll.u32 %s120_s1, 4  ;;  %s34_s13 = int_to_ptr.vmem [resolvable:$true] %s33_s13  ;;  %s36_s16 = int_to_ptr.hbm [resolvable:$true] %s35_s16 }
  0x78   :  { %v26_v1 = vpop.permute.xlu0 %25 }
  0x79   :  { %27 = vst [vmem:[#allocation5] sm:$0xff] %v26_v1 }
  0x7a   :  { %38 = dma.vmem_to_hbm [thread:$0]  %s34_s13, 128, %s36_s16, [#allocation4]  }
  0x7b   :  { %98 = dma.done.wait [#allocation4], 128  }
  0x7c   :  { %99 = vsyncadd [#allocation4], 4294967168 }
  0x7d   :  { %43 = vsyncpa [#allocation3], 1 }
  0x7e   :  { %44 = vsyncpa [#allocation4], 1 }

// kernel: relpos_mha_forward.1
= control target key start
LH: loop header
LB: loop body
LE: loop exit
PB: predicated region body
PF: predicated region fallthrough
CT: control target
= control target key end

     0   :  { %s4017_s0 = inlined_call_operand.vmem [shape: f32[2,16,256], index: 0, kind: input, shape index: {}]   ;;  %s4018_s1 = inlined_call_operand.vmem [shape: f32[2,16,256], index: 1, kind: input, shape index: {}]   ;;  %s4019_s2 = inlined_call_operand.vmem [shape: f32[2,16,256], index: 2, kind: input, shape index: {}]   ;;  %s4020_s3 = inlined_call_operand.vmem [shape: s32[2,1,16], index: 3, kind: input, shape index: {}]   ;;  %s4021_s4 = inlined_call_operand.vmem [shape: bf16[4,128,128], index: 4, kind: input, shape index: {}]   ;;  %s4022_s5 = inlined_call_operand.vmem [shape: bf16[256,256], index: 5, kind: input, shape index: {}]   ;;  %s4023_s6 = inlined_call_operand.vmem [shape: f32[1,256], index: 6, kind: input, shape index: {}]   ;;  %s4024_s7 = inlined_call_operand.vmem [shape: f32[1,256], index: 7, kind: input, shape index: {}]   ;;  %s4025_s8 = inlined_call_operand.vmem [shape: bf16[256,256], index: 8, kind: input, shape index: {}]   ;;  %s4026_s9 = inlined_call_operand.vmem [shape: f32[1,256], index: 9, kind: input, shape index: {}]   ;;  %s4027_s10 = inlined_call_operand.vmem [shape: bf16[256,256], index: 10, kind: input, shape index: {}]   ;;  %s4028_s11 = inlined_call_operand.vmem [shape: f32[1,256], index: 11, kind: input, shape index: {}]   ;;  %s4029_s12 = inlined_call_operand.vmem [shape: bf16[256,256], index: 12, kind: input, shape index: {}]   ;;  %s4030_s13 = inlined_call_operand.vmem [shape: f32[1,256], index: 13, kind: input, shape index: {}]   ;;  %s4031_s14 = inlined_call_operand.hbm [shape: bf16[2,16,256], index: 14, kind: output, shape index: {}]  }
   0x1   :  { %4049 = sst [smem:[#allocation24_spill]] %s4018_s1 }
   0x2   :  { %4050 = sst [smem:[#allocation25_spill]] %s4026_s9 }
   0x3   :  { %4051 = sst [smem:[#allocation26_spill]] %s4028_s11 }
   0x4   :  { %4052 = sst [smem:[#allocation27_spill]] %s4029_s12 }
   0x5   :  { %4053 = sst [smem:[#allocation28_spill]] %s4030_s13 }
   0x6   :  { %4054 = sst [smem:[#allocation29_spill]] %s4031_s14 }
   0x7   :  { %19 = vsyncpa [#allocation8], 0 }
   0x8   :  { %21 = vsyncpa [#allocation8 + $0x1], 0  ;;  %s3013_s29 = smov 0   ;;  %s3015_s30 = smov 0  }
   0x9   :  { %s3017_s15 = smov 0   ;;  %s3019_s16 = smov 0  }
   0xa   :  { %s3021_s17 = smov 0   ;;  %s3023_s18 = smov 0  }
   0xb   :  { %s3025_s19 = smov 0   ;;  %s3027_s20 = smov 0  }
   0xc   :  { %s3029_s21 = smov 0   ;;  %s3031_s22 = smov 0  }
   0xd LB: > { %4055 = sst [smem:[#allocation10_spill]] %s2896_s29  ;;  %s2000_s23 = sadd.s32 4294967295, %s2932_s22   ;;  %s2932_s22 = sphi %s3031_s22, %s27_s22   ;;  %s2928_s21 = sphi %s3029_s21, %s4096_s21   ;;  %s2924_s20 = sphi %s3027_s20, %s4095_s20   ;;  %s2920_s19 = sphi %s3025_s19, %s4094_s19   ;;  %s2916_s18 = sphi %s3023_s18, %s4093_s18   ;;  %s2912_s17 = sphi %s3021_s17, %s4092_s17   ;;  %s2908_s16 = sphi %s3019_s16, %s4091_s16   ;;  %s2904_s15 = sphi %s3017_s15, %s4090_s15   ;;  %s2900_s30 = sphi %s3015_s30, %s4089_s30   ;;  %s2896_s29 = sphi %s3013_s29, %s4088_s29  }
   0xe   : > { %4056 = sst [smem:[#allocation11_spill]] %s2900_s30  ;;  %s2001_s24 = sadd.s32 4294967294, %s2932_s22  }
   0xf   : > { %4057 = sst [smem:[#allocation12_spill]] %s2904_s15  ;;  %s39_s25 = sadd.s32 1, %s2920_s19 }
  0x10   : > { %4058 = sst [smem:[#allocation13_spill]] %s2916_s18  ;;  %p40_p0 = scmp.ge.s32.totalorder %s39_s25, 2 }
  0x11   : > { %4059 = sst [smem:[#allocation14_spill]] %s2920_s19  ;;  %s42_s26 = sadd.s32 1, %s2924_s20 }
  0x12   : > { %4060 = sst [smem:[#allocation15_spill]] %s2924_s20  ;;  %s46_s27 = sadd.s32 1, %s2928_s21 }
  0x13   : > { %4061 = sst [smem:[#allocation16_spill]] %s2928_s21  ;;  %p386_p1 = scmp.ne.s32.totalorder %s2904_s15, %s2900_s30 }
  0x14   : > { %4062 = sst [smem:[#allocation17_spill]] %s2932_s22  ;;  %s4098_s25 = smov (%p40_p0, %s39_s25), 0 }
  0x15   : > { %4063 = sst [smem:[#allocation18_spill]] %s4098_s25  ;;  %s4100_s26 = smov (!%p40_p0, %s42_s26), %s2924_s20 }
  0x16   : > { %p387_p2 = scmp.eq.s32.totalorder %s2000_s23, 7  ;;  %p392_p3 = scmp.ne.s32.totalorder %s2900_s30, %s2896_s29 }
  0x17   : > { %p44_p4 = scmp.ge.s32.totalorder %s4100_s26, 2  ;;  %p393_p5 = scmp.eq.s32.totalorder %s2001_s24, 7 }
  0x18   : > { %p3075_p6 = por %p387_p2, %p386_p1  ;;  %p2004_p8 = scmp.ge.s32.totalorder %s2932_s22, 1 }
  0x19   : > { %s4102_s26 = smov (%p44_p4, %s4100_s26), 0  ;;  %s4104_s27 = smov (!%p44_p4, %s46_s27), %s2928_s21 }
  0x1a   : > { %s4064_s28 = scalar_select %p3075_p6, 1, 0 }
  0x1b   : > { %4066 = sst [smem:[#allocation20_spill]] %s4102_s26  ;;  %p3082_p7 = por %p393_p5, %p392_p3 }
  0x1c   : > { %4065 = sst [smem:[#allocation19_spill]] %s4064_s28  ;;  %p48_p9 = scmp.ge.s32.totalorder %s4104_s27, 2 }
  0x1d   : > { %s4067_s19 = scalar_select %p3082_p7, 1, 0 }
  0x1e   : > { %p482_p10 = scmp.lt.s32.totalorder %s2932_s22, 9  ;;  %s372_s23 = ssub.s32 %s2924_s20, %s4102_s26 }
  0x1f   : > { %4068 = sst [smem:[#allocation21_spill]] %s4067_s19  ;;  %s4106_s27 = smov (%p48_p9, %s4104_s27), 0 }
  0x20   : > { %4069 = sst [smem:[#allocation22_spill]] %s4106_s27  ;;  %p483_p11 = pnand %p2004_p8, %p482_p10 }
  0x21   : > { %s371_s24 = ssub.s32 %s2928_s21, %s4106_s27  ;;  %s376_s29 = sadd.s32 1, %s2904_s15 }
  0x22   : > { %s373_s25 = sor.u32 %s372_s23, %s371_s24  ;;  %s4040_s19 = sand.u32 (!%p483_p11), 1, %s2900_s30  }
  0x23   : > { %p374_p12 = scmp.eq.s32.totalorder %s373_s25, 0  ;;  %486 = sbr.rel (%p483_p11) target bundleno = 1439 (0x59f), region = 76 }
  0x24   : > { %p551_p13 = scmp.lt.s32.totalorder (!%p483_p11), %s2916_s18, 1  ;;  %s3102_s26 = sshll.u32 (!%p483_p11), %s4040_s19, 3 }
  0x25   : > { %s3096_s14 = scalar_select %p374_p12, %s2904_s15, %s376_s29  }
  0x26   : > { %p553_p0 = scmp.lt.s32.totalorder (!%p483_p11), %s2912_s17, 1  ;;  %s3106_s27 = sshll.u32 (!%p483_p11), %s2912_s17, 1 }
  0x27   : > { %4070 = sst [smem:[#allocation23_spill]] %s3096_s14  ;;  %p574_p1 = scmp.lt.s32.totalorder (!%p483_p11), %s3106_s27, 3 }
  0x28   : > { %s3109_s29 = scalar_select %p551_p13, %s2916_s18, 1 }
  0x29   : > { %s4108_s17 = smov (!%p553_p0, %s2912_s17), 1  ;;  %s4071_s1 = sld [smem:[#allocation24_spill]] }
  0x2a   : > { %s2007_s25 = sshll.u32 %s3109_s29, 2  ;;  %s2585_s23 = sshll.u32 %s3109_s29, 5 }
  0x2b   : > { %s2006_s24 = sshll.u32 %s4108_s17, 1  ;;  %s3122_s28 = scalar_lea.vmem %s4019_s2, %s2585_s23 }
  0x2c   : > { %s557_s14 = sadd.s32 %s2007_s25, %s2006_s24  ;;  %s572_s12 = scalar_lea.vmem %s4020_s3, %s3109_s29 }
  0x2d   : > { %s2008_s30 = sshll.u32 %s557_s14, 3  ;;  %s550_s15 = scalar_lea.vmem [#allocation7], %s3102_s26 }
  0x2e   : > { %s3131_s17 = scalar_lea.vmem %s4017_s0, %s2008_s30  ;;  %p2016_p2 = scmp.ne.s32.totalorder %s2908_s16, 0 }
  0x2f   : > { %s3117_s19 = scalar_lea.vmem %s4071_s1, %s2585_s23  ;;  %s4072_s30 = sld [smem:[#allocation25_spill]] (!%p2016_p2) }
  0x30   : > { %s575_s20 = scalar_select %p574_p1, %s3106_s27, 3 }
  0x31   : > { %584 = sbr.rel (%p2016_p2) target bundleno = 300 (0x12c), region = 80 }
  0x32   : > { %s2587_s21 = sshll.u32 %s575_s20, 6 }
  0x33   : > { %s3138_s24 = scalar_lea.vmem %s4021_s4, %s2587_s21 }
  0x36   : > { %v2075_v0 = vld [vmem:[%s4022_s5 + $0x70] sm:$0xf]  ;;  %v2603_v1 = vld [vmem:[%s4022_s5 + $0x74] sm:$0xf0]  ;;  %v2602_v5 = vld [vmem:[%s4022_s5 + $0x74] sm:$0xf] }
  0x37   : > { %v2139_v2 = vld [vmem:[%s4022_s5 + $0xf0] sm:$0xf]  ;;  %v2076_v3 = vor.u32 %v2603_v1, %v2075_v0  ;;  %v2619_v4 = vld [vmem:[%s4022_s5 + $0xf4] sm:$0xf0]  ;;  %v2077_v6 = vld [vmem:[%s4022_s5 + $0x78] sm:$0xf0] }
  0x38   : > { %v2140_v7 = vor.u32 %v2619_v4, %v2139_v2  ;;  %v2080_v8 = vor.u32 %v2602_v5, %v2077_v6  ;;  %v2618_v9 = vld [vmem:[%s4022_s5 + $0xf4] sm:$0xf]  ;;  %v2141_v10 = vld [vmem:[%s4022_s5 + $0xf8] sm:$0xf0]  ;;  %v2067_v11 = vld [vmem:[%s4022_s5 + $0x60] sm:$0xf] }
  0x39   : > { %781 = vmatpush.bf16.msra.mxu0 %v2076_v3  ;;  %v2144_v12 = vor.u32 %v2618_v9, %v2141_v10  ;;  %v2601_v13 = vld [vmem:[%s4022_s5 + $0x64] sm:$0xf0]  ;;  %v2131_v14 = vld [vmem:[%s4022_s5 + $0xe0] sm:$0xf]  ;;  %v2600_v18 = vld [vmem:[%s4022_s5 + $0x64] sm:$0xf] }
  0x3a   : > { %v2617_v15 = vld [vmem:[%s4022_s5 + $0xe4] sm:$0xf0]  ;;  %794 = vmatpush.bf16.msra.mxu1 %v2140_v7  ;;  %807 = vmatpush.bf16.msra.mxu2 %v2080_v8  ;;  %v2068_v16 = vor.u32 %v2601_v13, %v2067_v11  ;;  %v2069_v19 = vld [vmem:[%s4022_s5 + $0x68] sm:$0xf0]  ;;  %v2616_v20 = vld [vmem:[%s4022_s5 + $0xe4] sm:$0xf] }
  0x3b   : > { %v2132_v17 = vor.u32 %v2617_v15, %v2131_v14  ;;  %820 = vmatpush.bf16.msra.mxu3 %v2144_v12  ;;  %v2072_v21 = vor.u32 %v2600_v18, %v2069_v19  ;;  %v2133_v22 = vld [vmem:[%s4022_s5 + $0xe8] sm:$0xf0]  ;;  %v2059_v23 = vld [vmem:[%s4022_s5 + $0x50] sm:$0xf]  ;;  %v2599_v24 = vld [vmem:[%s4022_s5 + $0x54] sm:$0xf0] }
  0x3c   : > { %v2136_v25 = vor.u32 %v2616_v20, %v2133_v22  ;;  %v2123_v26 = vld [vmem:[%s4022_s5 + $0xd0] sm:$0xf]  ;;  %v2615_v27 = vld [vmem:[%s4022_s5 + $0xd4] sm:$0xf0]  ;;  %v2598_v28 = vld [vmem:[%s4022_s5 + $0x54] sm:$0xf]  ;;  %v2060_v29 = vor.u32 %v2599_v24, %v2059_v23 }
  0x3d   : > { %782 = vmatpush.bf16.msra.mxu0 %v2068_v16  ;;  %v2061_v30 = vld [vmem:[%s4022_s5 + $0x58] sm:$0xf0]  ;;  %v2614_v31 = vld [vmem:[%s4022_s5 + $0xd4] sm:$0xf]  ;;  %v2124_v33 = vor.u32 %v2615_v27, %v2123_v26  ;;  %v2051_v35 = vld [vmem:[%s4022_s5 + $0x40] sm:$0xf] }
  0x3e   : > { %v2125_v32 = vld [vmem:[%s4022_s5 + $0xd8] sm:$0xf0]  ;;  %795 = vmatpush.bf16.msra.mxu1 %v2132_v17  ;;  %808 = vmatpush.bf16.msra.mxu2 %v2072_v21  ;;  %v2064_v34 = vor.u32 %v2598_v28, %v2061_v30  ;;  %v2597_v36 = vld [vmem:[%s4022_s5 + $0x44] sm:$0xf0]  ;;  %v2115_v37 = vld [vmem:[%s4022_s5 + $0xc0] sm:$0xf] }
  0x3f   : > { %821 = vmatpush.bf16.msra.mxu3 %v2136_v25  ;;  %v2128_v38 = vor.u32 %v2614_v31, %v2125_v32  ;;  %v2613_v39 = vld [vmem:[%s4022_s5 + $0xc4] sm:$0xf0]  ;;  %v2596_v40 = vld [vmem:[%s4022_s5 + $0x44] sm:$0xf]  ;;  %v2053_v41 = vld [vmem:[%s4022_s5 + $0x48] sm:$0xf0]  ;;  %v2052_v44 = vor.u32 %v2597_v36, %v2051_v35 }
  0x40   : > { %v2612_v42 = vld [vmem:[%s4022_s5 + $0xc4] sm:$0xf]  ;;  %v2117_v43 = vld [vmem:[%s4022_s5 + $0xc8] sm:$0xf0]  ;;  %v2116_v45 = vor.u32 %v2613_v39, %v2115_v37  ;;  %v2056_v46 = vor.u32 %v2596_v40, %v2053_v41  ;;  %v2043_v47 = vld [vmem:[%s4022_s5 + $0x30] sm:$0xf] }
  0x41   : > { %783 = vmatpush.bf16.msra.mxu0 %v2060_v29  ;;  %v2595_v48 = vld [vmem:[%s4022_s5 + $0x34] sm:$0xf0]  ;;  %v2107_v49 = vld [vmem:[%s4022_s5 + $0xb0] sm:$0xf]  ;;  %v2120_v50 = vor.u32 %v2612_v42, %v2117_v43  ;;  %v2594_v52 = vld [vmem:[%s4022_s5 + $0x34] sm:$0xf] }
  0x42   : > { %796 = vmatpush.bf16.msra.mxu1 %v2124_v33  ;;  %809 = vmatpush.bf16.msra.mxu2 %v2064_v34  ;;  %v2611_v51 = vld [vmem:[%s4022_s5 + $0xb4] sm:$0xf0]  ;;  %v2045_v53 = vld [vmem:[%s4022_s5 + $0x38] sm:$0xf0]  ;;  %v2610_v54 = vld [vmem:[%s4022_s5 + $0xb4] sm:$0xf]  ;;  %v2044_v56 = vor.u32 %v2595_v48, %v2043_v47 }
  0x43   : > { %822 = vmatpush.bf16.msra.mxu3 %v2128_v38  ;;  %v2109_v55 = vld [vmem:[%s4022_s5 + $0xb8] sm:$0xf0]  ;;  %v2108_v57 = vor.u32 %v2611_v51, %v2107_v49  ;;  %v2048_v58 = vor.u32 %v2594_v52, %v2045_v53  ;;  %v2035_v59 = vld [vmem:[%s4022_s5 + $0x20] sm:$0xf]  ;;  %v2593_v60 = vld [vmem:[%s4022_s5 + $0x24] sm:$0xf0] }
  0x44   : > { %v2099_v61 = vld [vmem:[%s4022_s5 + $0xa0] sm:$0xf]  ;;  %v2112_v62 = vor.u32 %v2610_v54, %v2109_v55  ;;  %v2609_v63 = vld [vmem:[%s4022_s5 + $0xa4] sm:$0xf0]  ;;  %v2592_v0 = vld [vmem:[%s4022_s5 + $0x24] sm:$0xf]  ;;  %v2036_v4 = vor.u32 %v2593_v60, %v2035_v59 }
  0x45   : > { %784 = vmatpush.bf16.msra.mxu0 %v2052_v44  ;;  %v2037_v1 = vld [vmem:[%s4022_s5 + $0x28] sm:$0xf0]  ;;  %v2608_v2 = vld [vmem:[%s4022_s5 + $0xa4] sm:$0xf]  ;;  %v2100_v5 = vor.u32 %v2609_v63, %v2099_v61  ;;  %v2027_v7 = vld [vmem:[%s4022_s5 + $0x10] sm:$0xf] }
  0x46   : > { %797 = vmatpush.bf16.msra.mxu1 %v2116_v45  ;;  %810 = vmatpush.bf16.msra.mxu2 %v2056_v46  ;;  %v2101_v3 = vld [vmem:[%s4022_s5 + $0xa8] sm:$0xf0]  ;;  %v2040_v6 = vor.u32 %v2592_v0, %v2037_v1  ;;  %v2591_v8 = vld [vmem:[%s4022_s5 + $0x14] sm:$0xf0]  ;;  %v2091_v9 = vld [vmem:[%s4022_s5 + $0x90] sm:$0xf] }
  0x47   : > { %823 = vmatpush.bf16.msra.mxu3 %v2120_v50  ;;  %v2104_v10 = vor.u32 %v2608_v2, %v2101_v3  ;;  %v2607_v11 = vld [vmem:[%s4022_s5 + $0x94] sm:$0xf0]  ;;  %v2590_v12 = vld [vmem:[%s4022_s5 + $0x14] sm:$0xf]  ;;  %v2029_v13 = vld [vmem:[%s4022_s5 + $0x18] sm:$0xf0]  ;;  %v2028_v16 = vor.u32 %v2591_v8, %v2027_v7 }
  0x48   : > { %v2606_v14 = vld [vmem:[%s4022_s5 + $0x94] sm:$0xf]  ;;  %v2093_v15 = vld [vmem:[%s4022_s5 + $0x98] sm:$0xf0]  ;;  %v2019_v17 = vld [vmem:[%s4022_s5] sm:$0xf]  ;;  %v2092_v19 = vor.u32 %v2607_v11, %v2091_v9  ;;  %v2032_v20 = vor.u32 %v2590_v12, %v2029_v13 }
  0x49   : > { %785 = vmatpush.bf16.msra.mxu0 %v2044_v56  ;;  %v2589_v18 = vld [vmem:[%s4022_s5 + $0x4] sm:$0xf0]  ;;  %v2083_v21 = vld [vmem:[%s4022_s5 + $0x80] sm:$0xf]  ;;  %v2588_v23 = vld [vmem:[%s4022_s5 + $0x4] sm:$0xf]  ;;  %v2096_v24 = vor.u32 %v2606_v14, %v2093_v15 }
  0x4a   : > { %798 = vmatpush.bf16.msra.mxu1 %v2108_v57  ;;  %811 = vmatpush.bf16.msra.mxu2 %v2048_v58  ;;  %v2605_v22 = vld [vmem:[%s4022_s5 + $0x84] sm:$0xf0]  ;;  %v2021_v25 = vld [vmem:[%s4022_s5 + $0x8] sm:$0xf0]  ;;  %v2604_v26 = vld [vmem:[%s4022_s5 + $0x84] sm:$0xf]  ;;  %v2020_v31 = vor.u32 %v2589_v18, %v2019_v17 }
  0x4b   : > { %824 = vmatpush.bf16.msra.mxu3 %v2112_v62  ;;  %v2085_v27 = vld [vmem:[%s4022_s5 + $0x88] sm:$0xf0]  ;;  %v2203_v28 = vld [vmem:[%s4025_s8 + $0x70] sm:$0xf]  ;;  %v2635_v29 = vld [vmem:[%s4025_s8 + $0x74] sm:$0xf0]  ;;  %v2084_v35 = vor.u32 %v2605_v22, %v2083_v21  ;;  %v2024_v36 = vor.u32 %v2588_v23, %v2021_v25 }
  0x4c   : > { %v2267_v30 = vld [vmem:[%s4025_s8 + $0xf0] sm:$0xf]  ;;  %v2651_v32 = vld [vmem:[%s4025_s8 + $0xf4] sm:$0xf0]  ;;  %v2634_v33 = vld [vmem:[%s4025_s8 + $0x74] sm:$0xf]  ;;  %v2088_v39 = vor.u32 %v2604_v26, %v2085_v27  ;;  %v2204_v40 = vor.u32 %v2635_v29, %v2203_v28 }
  0x4d   : > { %786 = vmatpush.bf16.msra.mxu0 %v2036_v4  ;;  %v2205_v34 = vld [vmem:[%s4025_s8 + $0x78] sm:$0xf0]  ;;  %v2650_v37 = vld [vmem:[%s4025_s8 + $0xf4] sm:$0xf]  ;;  %v2268_v41 = vor.u32 %v2651_v32, %v2267_v30  ;;  %v2195_v43 = vld [vmem:[%s4025_s8 + $0x60] sm:$0xf] }
  0x4e   : > { %799 = vmatpush.bf16.msra.mxu1 %v2100_v5  ;;  %812 = vmatpush.bf16.msra.mxu2 %v2040_v6  ;;  %v2269_v38 = vld [vmem:[%s4025_s8 + $0xf8] sm:$0xf0]  ;;  %v2208_v42 = vor.u32 %v2634_v33, %v2205_v34  ;;  %v2633_v44 = vld [vmem:[%s4025_s8 + $0x64] sm:$0xf0]  ;;  %v2259_v45 = vld [vmem:[%s4025_s8 + $0xe0] sm:$0xf] }
  0x4f   : > { %825 = vmatpush.bf16.msra.mxu3 %v2104_v10  ;;  %v2272_v46 = vor.u32 %v2650_v37, %v2269_v38  ;;  %v2649_v47 = vld [vmem:[%s4025_s8 + $0xe4] sm:$0xf0]  ;;  %v2632_v48 = vld [vmem:[%s4025_s8 + $0x64] sm:$0xf]  ;;  %v2197_v49 = vld [vmem:[%s4025_s8 + $0x68] sm:$0xf0]  ;;  %v2196_v52 = vor.u32 %v2633_v44, %v2195_v43 }
  0x50   : > { %v2648_v50 = vld [vmem:[%s4025_s8 + $0xe4] sm:$0xf]  ;;  %v2261_v51 = vld [vmem:[%s4025_s8 + $0xe8] sm:$0xf0]  ;;  %v2187_v53 = vld [vmem:[%s4025_s8 + $0x50] sm:$0xf]  ;;  %v2260_v54 = vor.u32 %v2649_v47, %v2259_v45  ;;  %v2200_v55 = vor.u32 %v2632_v48, %v2197_v49 }
  0x51   : > { %787 = vmatpush.bf16.msra.mxu0 %v2028_v16  ;;  %v2631_v56 = vld [vmem:[%s4025_s8 + $0x54] sm:$0xf0]  ;;  %v2251_v57 = vld [vmem:[%s4025_s8 + $0xd0] sm:$0xf]  ;;  %v585_v58 = vld [vmem:[%s3131_s17] sm:$0xff]  ;;  %v2264_v59 = vor.u32 %v2648_v50, %v2261_v51 }
  0x52   : > { %800 = vmatpush.bf16.msra.mxu1 %v2092_v19  ;;  %813 = vmatpush.bf16.msra.mxu2 %v2032_v20  ;;  %v2647_v60 = vld [vmem:[%s4025_s8 + $0xd4] sm:$0xf0]  ;;  %v2630_v61 = vld [vmem:[%s4025_s8 + $0x54] sm:$0xf]  ;;  %v2189_v62 = vld [vmem:[%s4025_s8 + $0x58] sm:$0xf0]  ;;  %v587_v63 = vpack.c.bf16 %v585_v58, %v585_v58  ;;  %v2188_v2 = vor.u32 %v2631_v56, %v2187_v53 }
  0x53   : > { %826 = vmatpush.bf16.msra.mxu3 %v2096_v24  ;;  %v2646_v0 = vld [vmem:[%s4025_s8 + $0xd4] sm:$0xf]  ;;  %v2253_v1 = vld [vmem:[%s4025_s8 + $0xd8] sm:$0xf0]  ;;  %v586_v3 = vld [vmem:[%s3131_s17 + $0x8] sm:$0xff]  ;;  %v2252_v4 = vor.u32 %v2647_v60, %v2251_v57  ;;  %v2192_v5 = vor.u32 %v2630_v61, %v2189_v62 }
  0x54   : > { %v2179_v6 = vld [vmem:[%s4025_s8 + $0x40] sm:$0xf]  ;;  %v2629_v7 = vld [vmem:[%s4025_s8 + $0x44] sm:$0xf0]  ;;  %v588_v9 = vpack.c.bf16 %v586_v3, %v586_v3  ;;  %v2256_v10 = vor.u32 %v2646_v0, %v2253_v1  ;;  %v2628_v12 = vld [vmem:[%s4025_s8 + $0x44] sm:$0xf] }
  0x55   : > { %788 = vmatpush.bf16.msra.mxu0 %v2020_v31  ;;  %v2243_v8 = vld [vmem:[%s4025_s8 + $0xc0] sm:$0xf]  ;;  %v2645_v11 = vld [vmem:[%s4025_s8 + $0xc4] sm:$0xf0]  ;;  %v2181_v13 = vld [vmem:[%s4025_s8 + $0x48] sm:$0xf0]  ;;  %v2180_v16 = vor.u32 %v2629_v7, %v2179_v6 }
  0x56   : > { %801 = vmatpush.bf16.msra.mxu1 %v2084_v35  ;;  %814 = vmatpush.bf16.msra.mxu2 %v2024_v36  ;;  %v2644_v14 = vld [vmem:[%s4025_s8 + $0xc4] sm:$0xf]  ;;  %v2245_v15 = vld [vmem:[%s4025_s8 + $0xc8] sm:$0xf0]  ;;  %v2244_v17 = vor.u32 %v2645_v11, %v2243_v8  ;;  %v2184_v18 = vor.u32 %v2628_v12, %v2181_v13  ;;  %v2171_v19 = vld [vmem:[%s4025_s8 + $0x30] sm:$0xf] }
  0x57   : > { %827 = vmatpush.bf16.msra.mxu3 %v2088_v39  ;;  %v2627_v20 = vld [vmem:[%s4025_s8 + $0x34] sm:$0xf0]  ;;  %v2235_v21 = vld [vmem:[%s4025_s8 + $0xb0] sm:$0xf]  ;;  %v2248_v22 = vor.u32 %v2644_v14, %v2245_v15  ;;  %v2626_v24 = vld [vmem:[%s4025_s8 + $0x34] sm:$0xf] }
  0x58   : > { %789 = vmatmul.bf16.vlgmr.msra.gmra.mxu0 %v587_v63  ;;  %v2643_v23 = vld [vmem:[%s4025_s8 + $0xb4] sm:$0xf0]  ;;  %v2173_v25 = vld [vmem:[%s4025_s8 + $0x38] sm:$0xf0]  ;;  %v2642_v26 = vld [vmem:[%s4025_s8 + $0xb4] sm:$0xf]  ;;  %v2172_v28 = vor.u32 %v2627_v20, %v2171_v19 }
  0x59   : > { %1057 = vmatpush.bf16.msrb.mxu0 %v2204_v40  ;;  %815 = vmatmul.bf16.vlgmr.msra.gmra.mxu2 %v587_v63  ;;  %v2237_v27 = vld [vmem:[%s4025_s8 + $0xb8] sm:$0xf0]  ;;  %v2236_v29 = vor.u32 %v2643_v23, %v2235_v21  ;;  %v2176_v30 = vor.u32 %v2626_v24, %v2173_v25  ;;  %v2163_v31 = vld [vmem:[%s4025_s8 + $0x20] sm:$0xf]  ;;  %v2625_v32 = vld [vmem:[%s4025_s8 + $0x24] sm:$0xf0] }
  0x5a   : > { %1071 = vmatpush.bf16.msrb.mxu1 %v2268_v41  ;;  %1085 = vmatpush.bf16.msrb.mxu2 %v2208_v42  ;;  %v2227_v33 = vld [vmem:[%s4025_s8 + $0xa0] sm:$0xf]  ;;  %v2240_v34 = vor.u32 %v2642_v26, %v2237_v27  ;;  %v2641_v35 = vld [vmem:[%s4025_s8 + $0xa4] sm:$0xf0]  ;;  %v2624_v36 = vld [vmem:[%s4025_s8 + $0x24] sm:$0xf]  ;;  %v2164_v40 = vor.u32 %v2625_v32, %v2163_v31 }
  0x5b   : > { %1099 = vmatpush.bf16.msrb.mxu3 %v2272_v46  ;;  %802 = vmatmul.bf16.vlgmr.msra.gmra.mxu1 %v588_v9  ;;  %v2165_v37 = vld [vmem:[%s4025_s8 + $0x28] sm:$0xf0]  ;;  %v2640_v38 = vld [vmem:[%s4025_s8 + $0xa4] sm:$0xf]  ;;  %v2228_v41 = vor.u32 %v2641_v35, %v2227_v33  ;;  %v2155_v43 = vld [vmem:[%s4025_s8 + $0x10] sm:$0xf] }
  0x5c   : > { %828 = vmatmul.bf16.vlgmr.msra.gmra.mxu3 %v588_v9  ;;  %v2229_v39 = vld [vmem:[%s4025_s8 + $0xa8] sm:$0xf0]  ;;  %v2168_v42 = vor.u32 %v2624_v36, %v2165_v37  ;;  %v2623_v44 = vld [vmem:[%s4025_s8 + $0x14] sm:$0xf0]  ;;  %v2219_v45 = vld [vmem:[%s4025_s8 + $0x90] sm:$0xf] }
  0x5d   : > { %1058 = vmatpush.bf16.msrb.mxu0 %v2196_v52  ;;  %v2232_v46 = vor.u32 %v2640_v38, %v2229_v39  ;;  %v2639_v47 = vld [vmem:[%s4025_s8 + $0x94] sm:$0xf0]  ;;  %v2622_v48 = vld [vmem:[%s4025_s8 + $0x14] sm:$0xf]  ;;  %v2157_v49 = vld [vmem:[%s4025_s8 + $0x18] sm:$0xf0]  ;;  %v2156_v52 = vor.u32 %v2623_v44, %v2155_v43 }
  0x5e   : > { %1072 = vmatpush.bf16.msrb.mxu1 %v2260_v54  ;;  %1086 = vmatpush.bf16.msrb.mxu2 %v2200_v55  ;;  %v2638_v50 = vld [vmem:[%s4025_s8 + $0x94] sm:$0xf]  ;;  %v2221_v51 = vld [vmem:[%s4025_s8 + $0x98] sm:$0xf0]  ;;  %v2147_v53 = vld [vmem:[%s4025_s8] sm:$0xf]  ;;  %v2220_v56 = vor.u32 %v2639_v47, %v2219_v45  ;;  %v2160_v57 = vor.u32 %v2622_v48, %v2157_v49 }
  0x5f   : > { %1100 = vmatpush.bf16.msrb.mxu3 %v2264_v59  ;;  %v2621_v54 = vld [vmem:[%s4025_s8 + $0x4] sm:$0xf0]  ;;  %v2211_v55 = vld [vmem:[%s4025_s8 + $0x80] sm:$0xf]  ;;  %v2620_v59 = vld [vmem:[%s4025_s8 + $0x4] sm:$0xf]  ;;  %v2224_v61 = vor.u32 %v2638_v50, %v2221_v51 }
  0x60   : > { %v2637_v58 = vld [vmem:[%s4025_s8 + $0x84] sm:$0xf0]  ;;  %v2149_v60 = vld [vmem:[%s4025_s8 + $0x8] sm:$0xf0]  ;;  %v2636_v62 = vld [vmem:[%s4025_s8 + $0x84] sm:$0xf] }
  0x61   : > { %1059 = vmatpush.bf16.msrb.mxu0 %v2188_v2  ;;  %v2213_v63 = vld [vmem:[%s4025_s8 + $0x88] sm:$0xf0]  ;;  %v2331_v0 = vld [vmem:[%s4027_s10 + $0x70] sm:$0xf]  ;;  %v2667_v1 = vld [vmem:[%s4027_s10 + $0x74] sm:$0xf0]  ;;  %v2212_v8 = vor.u32 %v2637_v58, %v2211_v55  ;;  %v2152_v9 = vor.u32 %v2620_v59, %v2149_v60 }
  0x62   : > { %1073 = vmatpush.bf16.msrb.mxu1 %v2252_v4  ;;  %1087 = vmatpush.bf16.msrb.mxu2 %v2192_v5  ;;  %v2395_v2 = vld [vmem:[%s4027_s10 + $0xf0] sm:$0xf]  ;;  %v2683_v3 = vld [vmem:[%s4027_s10 + $0xf4] sm:$0xf0]  ;;  %v2148_v4 = vor.u32 %v2621_v54, %v2147_v53  ;;  %v2666_v5 = vld [vmem:[%s4027_s10 + $0x74] sm:$0xf]  ;;  %v2216_v13 = vor.u32 %v2636_v62, %v2213_v63  ;;  %v2332_v14 = vor.u32 %v2667_v1, %v2331_v0 }
  0x63   : > { %1101 = vmatpush.bf16.msrb.mxu3 %v2256_v10  ;;  %v2333_v6 = vld [vmem:[%s4027_s10 + $0x78] sm:$0xf0]  ;;  %v2682_v7 = vld [vmem:[%s4027_s10 + $0xf4] sm:$0xf]  ;;  %v853_v11 = vld [vmem:[%s3117_s19] sm:$0xff] }
  0x64   : > { %v2397_v10 = vld [vmem:[%s4027_s10 + $0xf8] sm:$0xf0]  ;;  %v855_v12 = vld [vmem:[%s3117_s19 + $0x10] sm:$0xff]  ;;  %v854_v15 = vld [vmem:[%s3117_s19 + $0x8] sm:$0xff] }
  0x65   : > { %1060 = vmatpush.bf16.msrb.mxu0 %v2180_v16  ;;  %v856_v16 = vld [vmem:[%s3117_s19 + $0x18] sm:$0xff]  ;;  %v2323_v19 = vld [vmem:[%s4027_s10 + $0x60] sm:$0xf]  ;;  %v2665_v20 = vld [vmem:[%s4027_s10 + $0x64] sm:$0xf0]  ;;  %v857_v26 = vpack.c.bf16 %v855_v12, %v853_v11  ;;  %s4073_s19 = sld [smem:[#allocation26_spill]] }
  0x66   : > { %1074 = vmatpush.bf16.msrb.mxu1 %v2244_v17  ;;  %1088 = vmatpush.bf16.msrb.mxu2 %v2184_v18  ;;  %v2396_v17 = vor.u32 %v2683_v3, %v2395_v2  ;;  %v2336_v18 = vor.u32 %v2666_v5, %v2333_v6  ;;  %v2387_v21 = vld [vmem:[%s4027_s10 + $0xe0] sm:$0xf]  ;;  %v2681_v23 = vld [vmem:[%s4027_s10 + $0xe4] sm:$0xf0]  ;;  %v2664_v24 = vld [vmem:[%s4027_s10 + $0x64] sm:$0xf] }
  0x67   : > { %1102 = vmatpush.bf16.msrb.mxu3 %v2248_v22  ;;  %v2400_v22 = vor.u32 %v2682_v7, %v2397_v10  ;;  %v2325_v25 = vld [vmem:[%s4027_s10 + $0x68] sm:$0xf0]  ;;  %v2680_v27 = vld [vmem:[%s4027_s10 + $0xe4] sm:$0xf]  ;;  %v2388_v31 = vor.u32 %v2681_v23, %v2387_v21  ;;  %v2315_v33 = vld [vmem:[%s4027_s10 + $0x50] sm:$0xf] }
  0x68   : > { %v2328_v32 = vor.u32 %v2664_v24, %v2325_v25  ;;  %v2379_v35 = vld [vmem:[%s4027_s10 + $0xd0] sm:$0xf]  ;;  %v2679_v37 = vld [vmem:[%s4027_s10 + $0xd4] sm:$0xf0]  ;;  %v2662_v38 = vld [vmem:[%s4027_s10 + $0x54] sm:$0xf] }
  0x69   : > { %1061 = vmatpush.bf16.msrb.mxu0 %v2172_v28  ;;  %v2389_v28 = vld [vmem:[%s4027_s10 + $0xe8] sm:$0xf0]  ;;  %v2317_v39 = vld [vmem:[%s4027_s10 + $0x58] sm:$0xf0]  ;;  %v2380_v43 = vor.u32 %v2679_v37, %v2379_v35  ;;  %v2307_v45 = vld [vmem:[%s4027_s10 + $0x40] sm:$0xf] }
  0x6a   : > { %1075 = vmatpush.bf16.msrb.mxu1 %v2236_v29  ;;  %1089 = vmatpush.bf16.msrb.mxu2 %v2176_v30  ;;  %v858_v29 = vpack.c.bf16 %v856_v16, %v854_v15  ;;  %v2324_v30 = vor.u32 %v2665_v20, %v2323_v19  ;;  %v2392_v36 = vor.u32 %v2680_v27, %v2389_v28  ;;  %v2371_v47 = vld [vmem:[%s4027_s10 + $0xc0] sm:$0xf]  ;;  %v2677_v49 = vld [vmem:[%s4027_s10 + $0xc4] sm:$0xf0]  ;;  %v2660_v50 = vld [vmem:[%s4027_s10 + $0x44] sm:$0xf] }
  0x6b   : > { %1103 = vmatpush.bf16.msrb.mxu3 %v2240_v34  ;;  %v2663_v34 = vld [vmem:[%s4027_s10 + $0x54] sm:$0xf0]  ;;  %v2320_v44 = vor.u32 %v2662_v38, %v2317_v39  ;;  %v2309_v51 = vld [vmem:[%s4027_s10 + $0x48] sm:$0xf0]  ;;  %v2372_v55 = vor.u32 %v2677_v49, %v2371_v47  ;;  %v2363_v59 = vld [vmem:[%s4027_s10 + $0xb0] sm:$0xf] }
  0x6c   : > { %v2373_v53 = vld [vmem:[%s4027_s10 + $0xc8] sm:$0xf0]  ;;  %v2659_v58 = vld [vmem:[%s4027_s10 + $0x34] sm:$0xf0]  ;;  %v2658_v62 = vld [vmem:[%s4027_s10 + $0x34] sm:$0xf] }
  0x6d   : > { %1062 = vmatpush.bf16.msrb.mxu0 %v2164_v40  ;;  %v2678_v40 = vld [vmem:[%s4027_s10 + $0xd4] sm:$0xf]  ;;  %v2301_v63 = vld [vmem:[%s4027_s10 + $0x38] sm:$0xf0]  ;;  %v2291_v5 = vld [vmem:[%s4027_s10 + $0x20] sm:$0xf] }
  0x6e   : > { %1076 = vmatpush.bf16.msrb.mxu1 %v2228_v41  ;;  %1090 = vmatpush.bf16.msrb.mxu2 %v2168_v42  ;;  %v2381_v41 = vld [vmem:[%s4027_s10 + $0xd8] sm:$0xf0]  ;;  %v2316_v42 = vor.u32 %v2663_v34, %v2315_v33  ;;  %v2674_v0 = vld [vmem:[%s4027_s10 + $0xb4] sm:$0xf]  ;;  %v2657_v6 = vld [vmem:[%s4027_s10 + $0x24] sm:$0xf0] }
  0x6f   : > { %1104 = vmatpush.bf16.msrb.mxu3 %v2232_v46  ;;  %v2661_v46 = vld [vmem:[%s4027_s10 + $0x44] sm:$0xf0]  ;;  %v2384_v48 = vor.u32 %v2678_v40, %v2381_v41  ;;  %v2365_v1 = vld [vmem:[%s4027_s10 + $0xb8] sm:$0xf0]  ;;  %v2355_v7 = vld [vmem:[%s4027_s10 + $0xa0] sm:$0xf] }
  0x70   : > { %v2308_v54 = vor.u32 %v2661_v46, %v2307_v45  ;;  %v2656_v10 = vld [vmem:[%s4027_s10 + $0x24] sm:$0xf]  ;;  %v2293_v11 = vld [vmem:[%s4027_s10 + $0x28] sm:$0xf0]  ;;  %v2347_v19 = vld [vmem:[%s4027_s10 + $0x90] sm:$0xf] }
  0x71   : > { %1063 = vmatpush.bf16.msrb.mxu0 %v2156_v52  ;;  %v2676_v52 = vld [vmem:[%s4027_s10 + $0xc4] sm:$0xf]  ;;  %v2296_v16 = vor.u32 %v2656_v10, %v2293_v11  ;;  %v2671_v21 = vld [vmem:[%s4027_s10 + $0x94] sm:$0xf0]  ;;  %v2285_v23 = vld [vmem:[%s4027_s10 + $0x18] sm:$0xf0] }
  0x72   : > { %1077 = vmatpush.bf16.msrb.mxu1 %v2220_v56  ;;  %1091 = vmatpush.bf16.msrb.mxu2 %v2160_v57  ;;  %v2312_v56 = vor.u32 %v2660_v50, %v2309_v51  ;;  %v2299_v57 = vld [vmem:[%s4027_s10 + $0x30] sm:$0xf]  ;;  %v2376_v60 = vor.u32 %v2676_v52, %v2373_v53  ;;  %v2672_v12 = vld [vmem:[%s4027_s10 + $0xa4] sm:$0xf]  ;;  %v2670_v24 = vld [vmem:[%s4027_s10 + $0x94] sm:$0xf]  ;;  %v2348_v27 = vor.u32 %v2671_v21, %v2347_v19 }
  0x73   : > { %1105 = vmatpush.bf16.msrb.mxu3 %v2224_v61  ;;  %v2675_v61 = vld [vmem:[%s4027_s10 + $0xb4] sm:$0xf0]  ;;  %v2300_v2 = vor.u32 %v2659_v58, %v2299_v57  ;;  %v2349_v25 = vld [vmem:[%s4027_s10 + $0x98] sm:$0xf0]  ;;  %v2669_v33 = vld [vmem:[%s4027_s10 + $0x84] sm:$0xf0] }
  0x74   : > { %v2364_v3 = vor.u32 %v2675_v61, %v2363_v59  ;;  %v2652_v34 = vld [vmem:[%s4027_s10 + $0x4] sm:$0xf]  ;;  %v2277_v35 = vld [vmem:[%s4027_s10 + $0x8] sm:$0xf0]  ;;  %v1119_v40 = vld [vmem:[%s3122_s28 + $0x10] sm:$0xff] }
  0x75   : > { %1064 = vmatpush.bf16.msrb.mxu0 %v2148_v4  ;;  %v2304_v4 = vor.u32 %v2658_v62, %v2301_v63  ;;  %v2341_v37 = vld [vmem:[%s4027_s10 + $0x88] sm:$0xf0]  ;;  %v1117_v39 = vld [vmem:[%s3122_s28] sm:$0xff] }
  0x76   : > { %1078 = vmatpush.bf16.msrb.mxu1 %v2212_v8  ;;  %1092 = vmatpush.bf16.msrb.mxu2 %v2152_v9  ;;  %v2368_v8 = vor.u32 %v2674_v0, %v2365_v1  ;;  %v2673_v9 = vld [vmem:[%s4027_s10 + $0xa4] sm:$0xf0]  ;;  %v1121_v46 = vpack.c.bf16 %v1119_v40, %v1117_v39  ;;  %v833_v50 = vld [vmem:[%s4023_s6] sm:$0x3] }
  0x77   : > { %1106 = vmatpush.bf16.msrb.mxu3 %v2216_v13  ;;  %v2357_v13 = vld [vmem:[%s4027_s10 + $0xa8] sm:$0xf0]  ;;  %v2356_v15 = vor.u32 %v2673_v9, %v2355_v7  ;;  %v843_v51 = vld [vmem:[%s4024_s7] sm:$0x3] }
  0x78   : > { %1065 = vmatmul.bf16.vlgmr.msrb.gmra.mxu0 %v857_v26  ;;  %v2360_v20 = vor.u32 %v2672_v12, %v2357_v13  ;;  %v846_v57 = vperm.slane %v843_v51, 1 }
  0x79   : > { %1321 = vmatpush.bf16.msra.mxu0 %v2332_v14  ;;  %1093 = vmatmul.bf16.vlgmr.msrb.gmra.mxu2 %v857_v26  ;;  %v2292_v14 = vor.u32 %v2657_v6, %v2291_v5  ;;  %v891_v6 = vld [vmem:[%s4072_s30] sm:$0x3] }
  0x7a   : > { %1335 = vmatpush.bf16.msra.mxu1 %v2396_v17  ;;  %1349 = vmatpush.bf16.msra.mxu2 %v2336_v18  ;;  %v2283_v17 = vld [vmem:[%s4027_s10 + $0x10] sm:$0xf]  ;;  %v2655_v18 = vld [vmem:[%s4027_s10 + $0x14] sm:$0xf0]  ;;  %v893_v7 = vperm.slane %v891_v6, 0  ;;  %v894_v11 = vperm.slane %v891_v6, 1 }
  0x7b   : > { %1363 = vmatpush.bf16.msra.mxu3 %v2400_v22  ;;  %1079 = vmatmul.bf16.vlgmr.msrb.gmra.mxu1 %v858_v29  ;;  %v2654_v22 = vld [vmem:[%s4027_s10 + $0x14] sm:$0xf]  ;;  %v2284_v26 = vor.u32 %v2655_v18, %v2283_v17 }
  0x7c   : > { %1107 = vmatmul.bf16.vlgmr.msrb.gmra.mxu3 %v858_v29  ;;  %v2288_v28 = vor.u32 %v2654_v22, %v2285_v23  ;;  %v2275_v29 = vld [vmem:[%s4027_s10] sm:$0xf] }
  0x7d   : > { %1322 = vmatpush.bf16.msra.mxu0 %v2324_v30  ;;  %v2653_v30 = vld [vmem:[%s4027_s10 + $0x4] sm:$0xf0] }
  0x7e   : > { %1336 = vmatpush.bf16.msra.mxu1 %v2388_v31  ;;  %1350 = vmatpush.bf16.msra.mxu2 %v2328_v32  ;;  %v2339_v31 = vld [vmem:[%s4027_s10 + $0x80] sm:$0xf]  ;;  %v2352_v32 = vor.u32 %v2670_v24, %v2349_v25  ;;  %v2276_v38 = vor.u32 %v2653_v30, %v2275_v29 }
  0x7f   : > { %1364 = vmatpush.bf16.msra.mxu3 %v2392_v36  ;;  %v2668_v36 = vld [vmem:[%s4027_s10 + $0x84] sm:$0xf]  ;;  %v2340_v41 = vor.u32 %v2669_v33, %v2339_v31 }
  0x80   : > { %v2344_v45 = vor.u32 %v2668_v36, %v2341_v37 }
  0x81   : > { %1323 = vmatpush.bf16.msra.mxu0 %v2316_v42  ;;  %v2280_v42 = vor.u32 %v2652_v34, %v2277_v35 }
  0x82   : > { %1337 = vmatpush.bf16.msra.mxu1 %v2380_v43  ;;  %1351 = vmatpush.bf16.msra.mxu2 %v2320_v44  ;;  %v1118_v43 = vld [vmem:[%s3122_s28 + $0x8] sm:$0xff]  ;;  %v1120_v44 = vld [vmem:[%s3122_s28 + $0x18] sm:$0xff] }
  0x83   : > { %1365 = vmatpush.bf16.msra.mxu3 %v2384_v48  ;;  %v1122_v47 = vpack.c.bf16 %v1120_v44, %v1118_v43 }
  0x85   : > { %1324 = vmatpush.bf16.msra.mxu0 %v2308_v54  ;;  %v835_v54 = vperm.slane %v833_v50, 0 }
  0x86   : > { %1338 = vmatpush.bf16.msra.mxu1 %v2372_v55  ;;  %1352 = vmatpush.bf16.msra.mxu2 %v2312_v56  ;;  %v845_v55 = vperm.slane %v843_v51, 0  ;;  %v836_v56 = vperm.slane %v833_v50, 1 }
  0x87   : > { %1366 = vmatpush.bf16.msra.mxu3 %v2376_v60 }
  0x89   : > { %1325 = vmatpush.bf16.msra.mxu0 %v2300_v2 }
  0x8a   : > { %1339 = vmatpush.bf16.msra.mxu1 %v2364_v3  ;;  %1353 = vmatpush.bf16.msra.mxu2 %v2304_v4 }
  0x8b   : > { %1367 = vmatpush.bf16.msra.mxu3 %v2368_v8 }
  0x8d   : > { %1326 = vmatpush.bf16.msra.mxu0 %v2292_v14 }
  0x8e   : > { %1340 = vmatpush.bf16.msra.mxu1 %v2356_v15  ;;  %1354 = vmatpush.bf16.msra.mxu2 %v2296_v16 }
  0x8f   : > { %1368 = vmatpush.bf16.msra.mxu3 %v2360_v20 }
  0x91   : > { %1327 = vmatpush.bf16.msra.mxu0 %v2284_v26 }
  0x92   : > { %1341 = vmatpush.bf16.msra.mxu1 %v2348_v27  ;;  %1355 = vmatpush.bf16.msra.mxu2 %v2288_v28  ;;  %v1155_v27 = vld [vmem:[%s4073_s19] sm:$0x3] }
  0x93   : > { %1369 = vmatpush.bf16.msra.mxu3 %v2352_v32  ;;  %v1157_v28 = vperm.slane %v1155_v27, 0  ;;  %v1158_v31 = vperm.slane %v1155_v27, 1 }
  0x95   : > { %1328 = vmatpush.bf16.msra.mxu0 %v2276_v38 }
  0x96   : > { %1342 = vmatpush.bf16.msra.mxu1 %v2340_v41  ;;  %1356 = vmatpush.bf16.msra.mxu2 %v2280_v42 }
  0x97   : > { %1370 = vmatpush.bf16.msra.mxu3 %v2344_v45 }
  0x98   : > { %1329 = vmatmul.bf16.vlgmr.msra.gmra.mxu0 %v1121_v46 }
  0x99   : > { %1343 = vmatmul.bf16.vlgmr.msra.gmra.mxu1 %v1122_v47  ;;  %1357 = vmatmul.bf16.vlgmr.msra.gmra.mxu2 %v1121_v46 }
  0x9a   : > { %1371 = vmatmul.bf16.vlgmr.msra.gmra.mxu3 %v1122_v47 }
  0xd5   : > { %v790_v48 = vpop.f32.mrf.mxu0 }
  0xd8   : > { %v803_v49 = vpop.f32.mrf.mxu1 }
  0xd9   : > { %v804_v53 = vadd.f32 %v803_v49, %v790_v48 }
  0xdb   : > { %v839_v59 = vadd.f32 %v835_v54, %v804_v53  ;;  %v849_v60 = vadd.f32 %v845_v55, %v804_v53 }
  0xdc   : > { %v816_v52 = vpop.f32.mrf.mxu2 }
  0xdd   : > { %v792_v62 = vpop.f32.mrf.mxu0 }
  0xdf   : > { %v829_v58 = vpop.f32.mrf.mxu3 }
  0xe0   : > { %v830_v61 = vadd.f32 %v829_v58, %v816_v52  ;;  %v805_v63 = vpop.f32.mrf.mxu1 }
  0xe2   : > { %v840_v0 = vadd.f32 %v836_v56, %v830_v61  ;;  %v850_v1 = vadd.f32 %v846_v57, %v830_v61 }
  0xe4   : > { %v841_v2 = vpack.c.bf16 %v840_v0, %v839_v59  ;;  %v851_v3 = vpack.c.bf16 %v850_v1, %v849_v60  ;;  %v818_v4 = vpop.f32.mrf.mxu2 }
  0xe6   : > { %842 = vst [vmem:[#allocation2] sm:$0xff] %v841_v2 }
  0xe7   : > { %852 = vst [vmem:[#allocation3] sm:$0xff] %v851_v3  ;;  %v831_v5 = vpop.f32.mrf.mxu3 }
  0xf5   : > { %v1066_v8 = vpop.f32.mrf.mxu0 }
  0xf6   : > { %v1067_v10 = vadd.f32 %v1066_v8, %v893_v7 }
  0xf8   : > { %v1080_v9 = vpop.f32.mrf.mxu1 }
  0xf9   : > { %v1081_v14 = vadd.f32 %v1080_v9, %v1067_v10 }
  0xfc   : > { %v1094_v12 = vpop.f32.mrf.mxu2 }
  0xfd   : > { %v1095_v13 = vadd.f32 %v1094_v12, %v894_v11  ;;  %v1068_v17 = vpop.f32.mrf.mxu0 }
  0xfe   : > { %v1069_v19 = vadd.f32 %v1068_v17, %v893_v7 }
  0xff   : > { %v1108_v15 = vpop.f32.mrf.mxu3 }
 0x100   : > { %v1109_v16 = vadd.f32 %v1108_v15, %v1095_v13  ;;  %v1082_v20 = vpop.f32.mrf.mxu1 }
 0x101   : > { %v1083_v23 = vadd.f32 %v1082_v20, %v1069_v19 }
 0x102   : > { %v1113_v18 = vpack.c.bf16 %v1109_v16, %v1081_v14 }
 0x104   : > { %1115 = vst [vmem:[#allocation4] sm:$0xff] %v1113_v18  ;;  %v1096_v21 = vpop.f32.mrf.mxu2 }
 0x105   : > { %v1097_v22 = vadd.f32 %v1096_v21, %v894_v11 }
 0x107   : > { %v1110_v24 = vpop.f32.mrf.mxu3 }
 0x108   : > { %v1111_v25 = vadd.f32 %v1110_v24, %v1097_v22 }
 0x10a   : > { %v1114_v26 = vpack.c.bf16 %v1111_v25, %v1083_v23 }
 0x10c   : > { %1116 = vst [vmem:[#allocation4 + $0x8] sm:$0xff] %v1114_v26 }
 0x115   : > { %v1330_v29 = vpop.f32.mrf.mxu0 }
 0x116   : > { %v1331_v30 = vadd.f32 %v1330_v29, %v1157_v28  ;;  %v1344_v32 = vpop.f32.mrf.mxu1 }
 0x118   : > { %v1345_v34 = vadd.f32 %v1344_v32, %v1331_v30 }
 0x11c   : > { %v1358_v33 = vpop.f32.mrf.mxu2 }
 0x11d   : > { %v1359_v35 = vadd.f32 %v1358_v33, %v1158_v31  ;;  %v1372_v36 = vpop.f32.mrf.mxu3  ;;  %v1332_v38 = vpop.f32.mrf.mxu0 }
 0x11e   : > { %v1333_v40 = vadd.f32 %v1332_v38, %v1157_v28  ;;  %v1346_v43 = vpop.f32.mrf.mxu1 }
 0x11f   : > { %v1373_v37 = vadd.f32 %v1372_v36, %v1359_v35 }
 0x120   : > { %v1347_v45 = vadd.f32 %v1346_v43, %v1333_v40 }
 0x121   : > { %v1377_v39 = vpack.c.bf16 %v1373_v37, %v1345_v34 }
 0x123   : > { %1379 = vst [vmem:[#allocation5] sm:$0xff] %v1377_v39 }
 0x124   : > { %v1360_v41 = vpop.f32.mrf.mxu2 }
 0x125   : > { %v1361_v42 = vadd.f32 %v1360_v41, %v1158_v31  ;;  %v1374_v44 = vpop.f32.mrf.mxu3 }
 0x127   : > { %v1375_v46 = vadd.f32 %v1374_v44, %v1361_v42 }
 0x129   : > { %v1378_v47 = vpack.c.bf16 %v1375_v46, %v1347_v45 }
 0x12b   : > { %1380 = vst [vmem:[#allocation5 + $0x8] sm:$0xff] %v1378_v47 }
 0x12c PF: > { %s2686_s23 = sshll.u32 %s2908_s16, 6  ;;  %s2401_s21 = sshll.u32 %s2908_s16, 7  ;;  %v1478_v63 = vlaneseq  ;;  %v1526_v9 = vld [vmem:[%s572_s12] sm:$0x1]  ;;  %v2937_v11 = vmov 0   ;;  %vm1532_vm5 = vcmask 130048  }
 0x12d   : > { %s1400_s20 = scalar_lea.vmem %s3138_s24, %s2686_s23  ;;  %s1382_s25 = sshra.s32 %s2401_s21, 7  ;;  %vm1527_vm2 = vcmp.eq.s32.totalorder %v1526_v9, 0 }
 0x12e   : > { %v2694_v48 = vld [vmem:[%s1400_s20 + $0x38] sm:$0xff]  ;;  %v2693_v49 = vld [vmem:[%s1400_s20 + $0x30] sm:$0xff]  ;;  %v2692_v50 = vld [vmem:[%s1400_s20 + $0x28] sm:$0xff]  ;;  %s3743_s14 = sshll.u32 %s1382_s25, 2  ;;  %s2934_s13 = smov 1   ;;  %v1479_v0 = vshrl.u32 %v1478_v63, 7 }
 0x12f   : > { %1465 = vmatpush.bf16.xpose.msra.mxu0 %v2694_v48  ;;  %v2691_v51 = vld [vmem:[%s1400_s20 + $0x20] sm:$0xff]  ;;  %v2690_v52 = vld [vmem:[%s1400_s20 + $0x18] sm:$0xff]  ;;  %v2689_v53 = vld [vmem:[%s1400_s20 + $0x10] sm:$0xff]  ;;  %s1388_s24 = scalar_lea.vmem [#allocation3], %s3743_s14  ;;  %s1391_s17 = scalar_lea.vmem [#allocation4], %s3743_s14  ;;  %v1528_v12 = vsel %vm1527_vm2, 1, %v2937_v11 }
 0x130   : > { %v2688_v54 = vld [vmem:[%s1400_s20 + $0x8] sm:$0xff]  ;;  %v2687_v55 = vld [vmem:[%s1400_s20] sm:$0xff]  ;;  %s1385_s18 = scalar_lea.vmem [#allocation2], %s3743_s14  ;;  %v1484_v1 = vand.u32 1, %v1479_v0  ;;  %s2935_s28 = smov 2   ;;  %v1493_v5 = vand.u32 2, %v1479_v0 }
 0x131   : > { %v1389_v56 = vld [vmem:[%s1388_s24] sm:$0xf]  ;;  %v2684_v60 = vld [vmem:[%s1391_s17 + $0x4] sm:$0xf0]  ;;  %s2936_s9 = smov 4   ;;  %v1502_v10 = vand.u32 4, %v1479_v0 }
 0x132   : > { %v2442_v59 = vld [vmem:[%s1391_s17] sm:$0xf]  ;;  %vm1485_vm0 = vcmp.ne.s32.totalorder %v1484_v1, 0  ;;  %vm1494_vm1 = vcmp.ne.s32.totalorder %v1493_v5, 0  ;;  %v1529_v13 = vperm.slane %v1528_v12, 0  ;;  %s1395_s12 = scalar_lea.vmem [#allocation5], %s3743_s14 }
 0x133   : > { %v2443_v61 = vor.u32 %v2684_v60, %v2442_v59  ;;  %v1386_v62 = vld [vmem:[%s1385_s18] sm:$0xf]  ;;  %vm1503_vm3 = vcmp.ne.s32.totalorder %v1502_v10, 0  ;;  %v2685_v26 = vld [vmem:[%s1395_s12 + $0x4] sm:$0xf0]  ;;  %s1570_s29 = scalar_lea.vmem [#allocation6], %s3743_s14 }
 0x134   : > { %vm3753_vm4 = vcmp.eq.s32.totalorder %v1529_v13, 1  ;;  %v2446_v25 = vld [vmem:[%s1395_s12] sm:$0xf]  ;;  %p2450_p3 = scmp.ne.s32.totalorder %s2908_s16, 1 }
 0x135   : > { %1520 = vmatpush.bf16.xpose.msra.mxu1 %v2443_v61  ;;  %v2447_v27 = vor.u32 %v2685_v26, %v2446_v25  ;;  %s4076_s19 = sld [smem:[#allocation27_spill]] (!%p2450_p3) }
 0x136   : > { %s4078_s25 = sld [smem:[#allocation28_spill]] (!%p2450_p3) }
 0x137   : > { %1466 = vmatpush.bf16.xpose.msra.mxu0 %v2693_v49  ;;  %1562 = vmatpush.bf16.msra.mxu2 %v2447_v27 }
 0x13b   : > { %s4077_s23 = smov (!%p2450_p3), %s4076_s19 }
 0x13c   : > { %1521 = vmatmul.bf16.vlgmr.msra.gmra.mxu1 %v1386_v62 }
 0x13f   : > { %1467 = vmatpush.bf16.xpose.msra.mxu0 %v2692_v50 }
 0x147   : > { %1468 = vmatpush.bf16.xpose.msra.mxu0 %v2691_v51 }
 0x14f   : > { %1469 = vmatpush.bf16.xpose.msra.mxu0 %v2690_v52 }
 0x157   : > { %1470 = vmatpush.bf16.xpose.msra.mxu0 %v2689_v53 }
 0x15f   : > { %1471 = vmatpush.bf16.xpose.msra.mxu0 %v2688_v54 }
 0x167   : > { %1472 = vmatpush.bf16.xpose.msra.mxu0 %v2687_v55 }
 0x16e   : > { %1473 = vmatmul.bf16.vlgmr.msra.gmra.mxu0 %v1389_v56 }
 0x1b9   : > { %v1522_v4 = vpop.f32.mrf.mxu1 }
 0x1c1   : > { %v1524_v6 = vpop.f32.mrf.mxu1 }
 0x1eb   : > { %v1474_v57 = vpop.f32.mrf.mxu0 }
 0x1ec   : > { %1481 = vrot.lane.b32.xlu0 %v1474_v57, %s2934_s13 }
 0x1f3   : > { %v1476_v58 = vpop.f32.mrf.mxu0 }
 0x25e   : > { %v1482_v2 = vpop.permute.xlu0 %1481 }
 0x25f   : > { %v1488_v3 = vsel %vm1485_vm0, %v1482_v2, %v1474_v57 }
 0x260   : > { %1490 = vrot.lane.b32.xlu0 %v1488_v3, %s2935_s28 }
 0x2d2   : > { %v1491_v7 = vpop.permute.xlu0 %1490 }
 0x2d3   : > { %v1497_v8 = vsel %vm1494_vm1, %v1491_v7, %v1488_v3 }
 0x2d4   : > { %1499 = vrot.lane.b32.xlu1 %v1497_v8, %s2936_s9 }
 0x346   : > { %v1500_v14 = vpop.permute.xlu1 %1499 }
 0x347   : > { %v1506_v15 = vsel %vm1503_vm3, %v1500_v14, %v1497_v8 }
 0x348   : > { %v1523_v17 = vadd.f32 %v1522_v4, %v1506_v15 }
 0x34a   : > { %v1531_v18 = vsel %vm3753_vm4, -3.4028235e+38, %v1523_v17 }
 0x34b   : > { %v1533_v19 = vsel %vm1532_vm5, %v1531_v18, -inf }
 0x34c   : > { %1534 = vmax.xlane.f32.xlu1 %v1533_v19 }
 0x3bf   : > { %v1535_v20 = vpop.xlane.xlu1 %1534 }
 0x3c0   : > { %v1536_v21 = vsub.f32 %v1531_v18, %v1535_v20 }
 0x3c2   : > { %v1537_v22 = vmul.f32 1.442695, %v1536_v21 }
 0x3c4   : > { %2818 = vpow2.f32 %v1537_v22 }
 0x3ca   : > { %v2819_v23 = vpop.eup %2818 }
 0x3cb   : > { %v1539_v24 = vsel %vm1532_vm5, %v2819_v23, 0.0 }
 0x3cc   : > { %1540 = vadd.xlane.f32.xlu2 %v1539_v24 }
 0x43f   : > { %v1541_v28 = vpop.xlane.xlu2 %1540 }
 0x440   : > { %2820 = vrcp.f32 %v1541_v28 }
 0x446   : > { %v2821_v29 = vpop.eup %2820 }
 0x447   : > { %v1543_v30 = vmul.f32 %v2821_v29, %v2819_v23 }
 0x449   : > { %v1544_v31 = vsel %vm3753_vm4, 0.0, %v1543_v30 }
 0x44a   : > { %v1545_v32 = vpack.c.bf16 %v1544_v31, %v1544_v31 }
 0x44c   : > { %2448 = vmatmul.msk.bf16.vlgmr.msra.gmra.mxu2 %vm1532_vm5, %v1545_v32 }
 0x4cf   : > { %v1564_v33 = vpop.f32.mrf.mxu2 }
 0x4d0   : > { %v1568_v34 = vpack.c.bf16 %v1564_v33, %v1564_v33 }
 0x4d2   : > { %1571 = vst [vmem:[%s1570_s29] sm:$0xf] %v1568_v34 }
 0x4d3   : > { %1575 = sbr.rel (%p2450_p3) target bundleno = 1416 (0x588), region = 84 }
 0x4d7   : > { %v1566_v35 = vpop.f32.mrf.mxu2 }
 0x4d8   : > { %v2509_v36 = vld [vmem:[%s4076_s19 + $0x70] sm:$0xf]  ;;  %v2710_v37 = vld [vmem:[%s4077_s23 + $0x74] sm:$0xf0]  ;;  %v2709_v41 = vld [vmem:[%s4077_s23 + $0x74] sm:$0xf] }
 0x4d9   : > { %v2573_v38 = vld [vmem:[%s4077_s23 + $0xf0] sm:$0xf]  ;;  %v2510_v39 = vor.u32 %v2710_v37, %v2509_v36  ;;  %v2726_v40 = vld [vmem:[%s4077_s23 + $0xf4] sm:$0xf0]  ;;  %v2511_v42 = vld [vmem:[%s4077_s23 + $0x78] sm:$0xf0] }
 0x4da   : > { %v2574_v43 = vor.u32 %v2726_v40, %v2573_v38  ;;  %v2514_v44 = vor.u32 %v2709_v41, %v2511_v42  ;;  %v2725_v45 = vld [vmem:[%s4077_s23 + $0xf4] sm:$0xf]  ;;  %v2575_v46 = vld [vmem:[%s4077_s23 + $0xf8] sm:$0xf0]  ;;  %v2501_v47 = vld [vmem:[%s4077_s23 + $0x60] sm:$0xf] }
 0x4db   : > { %1782 = vmatpush.bf16.msra.mxu0 %v2510_v39  ;;  %v2578_v48 = vor.u32 %v2725_v45, %v2575_v46  ;;  %v2708_v49 = vld [vmem:[%s4077_s23 + $0x64] sm:$0xf0]  ;;  %v2565_v50 = vld [vmem:[%s4077_s23 + $0xe0] sm:$0xf]  ;;  %v2707_v54 = vld [vmem:[%s4077_s23 + $0x64] sm:$0xf] }
 0x4dc   : > { %v2724_v51 = vld [vmem:[%s4077_s23 + $0xe4] sm:$0xf0]  ;;  %1795 = vmatpush.bf16.msra.mxu1 %v2574_v43  ;;  %1808 = vmatpush.bf16.msra.mxu2 %v2514_v44  ;;  %v2502_v52 = vor.u32 %v2708_v49, %v2501_v47  ;;  %v2503_v55 = vld [vmem:[%s4077_s23 + $0x68] sm:$0xf0]  ;;  %v2723_v56 = vld [vmem:[%s4077_s23 + $0xe4] sm:$0xf] }
 0x4dd   : > { %v2566_v53 = vor.u32 %v2724_v51, %v2565_v50  ;;  %1821 = vmatpush.bf16.msra.mxu3 %v2578_v48  ;;  %v2506_v57 = vor.u32 %v2707_v54, %v2503_v55  ;;  %v2567_v58 = vld [vmem:[%s4077_s23 + $0xe8] sm:$0xf0]  ;;  %v2493_v59 = vld [vmem:[%s4077_s23 + $0x50] sm:$0xf]  ;;  %v2706_v60 = vld [vmem:[%s4077_s23 + $0x54] sm:$0xf0] }
 0x4de   : > { %v2570_v61 = vor.u32 %v2723_v56, %v2567_v58  ;;  %v2557_v62 = vld [vmem:[%s4077_s23 + $0xd0] sm:$0xf]  ;;  %v2722_v63 = vld [vmem:[%s4077_s23 + $0xd4] sm:$0xf0]  ;;  %v2705_v0 = vld [vmem:[%s4077_s23 + $0x54] sm:$0xf]  ;;  %v2494_v1 = vor.u32 %v2706_v60, %v2493_v59 }
 0x4df   : > { %1783 = vmatpush.bf16.msra.mxu0 %v2502_v52  ;;  %v2495_v2 = vld [vmem:[%s4077_s23 + $0x58] sm:$0xf0]  ;;  %v2721_v3 = vld [vmem:[%s4077_s23 + $0xd4] sm:$0xf]  ;;  %v2558_v5 = vor.u32 %v2722_v63, %v2557_v62  ;;  %v2485_v7 = vld [vmem:[%s4077_s23 + $0x40] sm:$0xf] }
 0x4e0   : > { %v2559_v4 = vld [vmem:[%s4077_s23 + $0xd8] sm:$0xf0]  ;;  %1796 = vmatpush.bf16.msra.mxu1 %v2566_v53  ;;  %1809 = vmatpush.bf16.msra.mxu2 %v2506_v57  ;;  %v2498_v6 = vor.u32 %v2705_v0, %v2495_v2  ;;  %v2704_v8 = vld [vmem:[%s4077_s23 + $0x44] sm:$0xf0]  ;;  %v2549_v9 = vld [vmem:[%s4077_s23 + $0xc0] sm:$0xf] }
 0x4e1   : > { %1822 = vmatpush.bf16.msra.mxu3 %v2570_v61  ;;  %v2562_v10 = vor.u32 %v2721_v3, %v2559_v4  ;;  %v2720_v11 = vld [vmem:[%s4077_s23 + $0xc4] sm:$0xf0]  ;;  %v2703_v12 = vld [vmem:[%s4077_s23 + $0x44] sm:$0xf]  ;;  %v2487_v13 = vld [vmem:[%s4077_s23 + $0x48] sm:$0xf0]  ;;  %v2486_v16 = vor.u32 %v2704_v8, %v2485_v7 }
 0x4e2   : > { %v2719_v14 = vld [vmem:[%s4077_s23 + $0xc4] sm:$0xf]  ;;  %v2551_v15 = vld [vmem:[%s4077_s23 + $0xc8] sm:$0xf0]  ;;  %v2550_v17 = vor.u32 %v2720_v11, %v2549_v9  ;;  %v2490_v18 = vor.u32 %v2703_v12, %v2487_v13  ;;  %v2477_v19 = vld [vmem:[%s4077_s23 + $0x30] sm:$0xf] }
 0x4e3   : > { %1784 = vmatpush.bf16.msra.mxu0 %v2494_v1  ;;  %v2702_v20 = vld [vmem:[%s4077_s23 + $0x34] sm:$0xf0]  ;;  %v2541_v21 = vld [vmem:[%s4077_s23 + $0xb0] sm:$0xf]  ;;  %v2554_v22 = vor.u32 %v2719_v14, %v2551_v15  ;;  %v2701_v24 = vld [vmem:[%s4077_s23 + $0x34] sm:$0xf] }
 0x4e4   : > { %1797 = vmatpush.bf16.msra.mxu1 %v2558_v5  ;;  %1810 = vmatpush.bf16.msra.mxu2 %v2498_v6  ;;  %v2718_v23 = vld [vmem:[%s4077_s23 + $0xb4] sm:$0xf0]  ;;  %v2479_v25 = vld [vmem:[%s4077_s23 + $0x38] sm:$0xf0]  ;;  %v2717_v26 = vld [vmem:[%s4077_s23 + $0xb4] sm:$0xf]  ;;  %v2478_v28 = vor.u32 %v2702_v20, %v2477_v19 }
 0x4e5   : > { %1823 = vmatpush.bf16.msra.mxu3 %v2562_v10  ;;  %v2543_v27 = vld [vmem:[%s4077_s23 + $0xb8] sm:$0xf0]  ;;  %v2542_v29 = vor.u32 %v2718_v23, %v2541_v21  ;;  %v2482_v30 = vor.u32 %v2701_v24, %v2479_v25  ;;  %v2469_v31 = vld [vmem:[%s4077_s23 + $0x20] sm:$0xf]  ;;  %v2700_v32 = vld [vmem:[%s4077_s23 + $0x24] sm:$0xf0] }
 0x4e6   : > { %v2533_v33 = vld [vmem:[%s4077_s23 + $0xa0] sm:$0xf]  ;;  %v2546_v34 = vor.u32 %v2717_v26, %v2543_v27  ;;  %v2716_v35 = vld [vmem:[%s4077_s23 + $0xa4] sm:$0xf0]  ;;  %v2699_v36 = vld [vmem:[%s4077_s23 + $0x24] sm:$0xf]  ;;  %v2470_v40 = vor.u32 %v2700_v32, %v2469_v31 }
 0x4e7   : > { %1785 = vmatpush.bf16.msra.mxu0 %v2486_v16  ;;  %v2471_v37 = vld [vmem:[%s4077_s23 + $0x28] sm:$0xf0]  ;;  %v2715_v38 = vld [vmem:[%s4077_s23 + $0xa4] sm:$0xf]  ;;  %v2534_v41 = vor.u32 %v2716_v35, %v2533_v33  ;;  %v2461_v43 = vld [vmem:[%s4077_s23 + $0x10] sm:$0xf] }
 0x4e8   : > { %1798 = vmatpush.bf16.msra.mxu1 %v2550_v17  ;;  %1811 = vmatpush.bf16.msra.mxu2 %v2490_v18  ;;  %v2535_v39 = vld [vmem:[%s4077_s23 + $0xa8] sm:$0xf0]  ;;  %v2474_v42 = vor.u32 %v2699_v36, %v2471_v37  ;;  %v2698_v44 = vld [vmem:[%s4077_s23 + $0x14] sm:$0xf0]  ;;  %v2525_v45 = vld [vmem:[%s4077_s23 + $0x90] sm:$0xf] }
 0x4e9   : > { %1824 = vmatpush.bf16.msra.mxu3 %v2554_v22  ;;  %v2538_v46 = vor.u32 %v2715_v38, %v2535_v39  ;;  %v2714_v47 = vld [vmem:[%s4077_s23 + $0x94] sm:$0xf0]  ;;  %v2697_v48 = vld [vmem:[%s4077_s23 + $0x14] sm:$0xf]  ;;  %v2463_v49 = vld [vmem:[%s4077_s23 + $0x18] sm:$0xf0]  ;;  %v2462_v52 = vor.u32 %v2698_v44, %v2461_v43 }
 0x4ea   : > { %v2713_v50 = vld [vmem:[%s4077_s23 + $0x94] sm:$0xf]  ;;  %v2527_v51 = vld [vmem:[%s4077_s23 + $0x98] sm:$0xf0]  ;;  %v2526_v54 = vor.u32 %v2714_v47, %v2525_v45  ;;  %v2466_v55 = vor.u32 %v2697_v48, %v2463_v49  ;;  %v2453_v56 = vld [vmem:[%s4077_s23] sm:$0xf] }
 0x4eb   : > { %1786 = vmatpush.bf16.msra.mxu0 %v2478_v28  ;;  %v1576_v53 = vld [vmem:[#allocation6] sm:$0xff]  ;;  %v2696_v57 = vld [vmem:[%s4077_s23 + $0x4] sm:$0xf0]  ;;  %v2517_v58 = vld [vmem:[%s4077_s23 + $0x80] sm:$0xf]  ;;  %v2530_v59 = vor.u32 %v2713_v50, %v2527_v51 }
 0x4ec   : > { %1799 = vmatpush.bf16.msra.mxu1 %v2542_v29  ;;  %1812 = vmatpush.bf16.msra.mxu2 %v2482_v30  ;;  %v2712_v60 = vld [vmem:[%s4077_s23 + $0x84] sm:$0xf0]  ;;  %v2695_v61 = vld [vmem:[%s4077_s23 + $0x4] sm:$0xf]  ;;  %v2455_v62 = vld [vmem:[%s4077_s23 + $0x8] sm:$0xf0]  ;;  %v1616_v1 = vunpack.c.l.b16 %v1576_v53  ;;  %v2454_v2 = vor.u32 %v2696_v57, %v2453_v56  ;;  %v1617_v3 = vunpack.c.h.b16 %v1576_v53 }
 0x4ed   : > { %1825 = vmatpush.bf16.msra.mxu3 %v2546_v34  ;;  %v2711_v63 = vld [vmem:[%s4077_s23 + $0x84] sm:$0xf]  ;;  %v2519_v0 = vld [vmem:[%s4077_s23 + $0x88] sm:$0xf0]  ;;  %v2518_v4 = vor.u32 %v2712_v60, %v2517_v58  ;;  %v2458_v5 = vor.u32 %v2695_v61, %v2455_v62  ;;  %v1609_v9 = vld [vmem:[%s4078_s25] sm:$0x3] }
 0x4ee   : > { %v2522_v6 = vor.u32 %v2711_v63, %v2519_v0  ;;  %v1618_v7 = vpack.c.b16 %v1616_v1, %v1616_v1  ;;  %v1619_v8 = vpack.c.b16 %v1617_v3, %v1617_v3  ;;  %v1611_v12 = vperm.slane %v1609_v9, 0 }
 0x4ef   : > { %1787 = vmatpush.bf16.msra.mxu0 %v2470_v40  ;;  %v1612_v13 = vperm.slane %v1609_v9, 1 }
 0x4f0   : > { %1800 = vmatpush.bf16.msra.mxu1 %v2534_v41  ;;  %1813 = vmatpush.bf16.msra.mxu2 %v2474_v42 }
 0x4f1   : > { %1826 = vmatpush.bf16.msra.mxu3 %v2538_v46 }
 0x4f3   : > { %1788 = vmatpush.bf16.msra.mxu0 %v2462_v52 }
 0x4f4   : > { %1801 = vmatpush.bf16.msra.mxu1 %v2526_v54  ;;  %1814 = vmatpush.bf16.msra.mxu2 %v2466_v55 }
 0x4f5   : > { %1827 = vmatpush.bf16.msra.mxu3 %v2530_v59 }
 0x4f7   : > { %1789 = vmatpush.bf16.msra.mxu0 %v2454_v2 }
 0x4f8   : > { %1802 = vmatpush.bf16.msra.mxu1 %v2518_v4  ;;  %1815 = vmatpush.bf16.msra.mxu2 %v2458_v5 }
 0x4f9   : > { %1828 = vmatpush.bf16.msra.mxu3 %v2522_v6 }
 0x4fa   : > { %1790 = vmatmul.bf16.vlgmr.msra.gmra.mxu0 %v1618_v7 }
 0x4fb   : > { %1803 = vmatmul.bf16.vlgmr.msra.gmra.mxu1 %v1619_v8  ;;  %1816 = vmatmul.bf16.vlgmr.msra.gmra.mxu2 %v1618_v7 }
 0x4fc   : > { %1829 = vmatmul.bf16.vlgmr.msra.gmra.mxu3 %v1619_v8 }
 0x577   : > { %v1791_v10 = vpop.f32.mrf.mxu0 }
 0x578   : > { %v1804_v11 = vpop.f32.mrf.mxu1  ;;  %v1792_v14 = vadd.f32 %v1791_v10, %v1611_v12 }
 0x57a   : > { %v1805_v20 = vadd.f32 %v1804_v11, %v1792_v14 }
 0x57e   : > { %v1817_v15 = vpop.f32.mrf.mxu2 }
 0x57f   : > { %v1818_v16 = vadd.f32 %v1817_v15, %v1612_v13  ;;  %v1830_v17 = vpop.f32.mrf.mxu3  ;;  %v1793_v18 = vpop.f32.mrf.mxu0 }
 0x580   : > { %v1806_v19 = vpop.f32.mrf.mxu1 }
 0x581   : > { %v1831_v21 = vadd.f32 %v1830_v17, %v1818_v16 }
 0x583   : > { %v1834_v22 = vpack.c.bf16 %v1831_v21, %v1805_v20 }
 0x585   : > { %1835 = vst [vmem:[%s550_s15] sm:$0xff] %v1834_v22 }
 0x586   : > { %v1819_v23 = vpop.f32.mrf.mxu2 }
 0x587   : > { %v1832_v24 = vpop.f32.mrf.mxu3 }
 0x588 PF: > { %s4079_s24 = sld [smem:[#allocation13_spill]]  ;;  %s1852_s18 = sshll.u32 %s550_s15, 4  ;;  %s1853_s18 = int_to_ptr.vmem [resolvable:$true] %s1852_s18 }
 0x589   : > { %s4080_s13 = sld [smem:[#allocation11_spill]] }
 0x58a   : > { %s4082_s30 = sld [smem:[#allocation29_spill]] }
 0x58e   : > { %s2581_s17 = sshll.u32 %s4079_s24, 2 }
 0x58f   : > { %s1848_s16 = sadd.s32 %s2581_s17, %s3106_s27  ;;  %s4084_s22 = sand.u32 1, %s4080_s13  }
 0x590   : > { %s2582_s28 = sshll.u32 %s1848_s16, 2  ;;  %s4083_s12 = smov %s4082_s30 }
 0x591   : > { %s1850_s29 = scalar_lea.hbm %s4082_s30, %s2582_s28  ;;  %s1837_s19 = scalar_lea.sflag [#allocation8], %s4084_s22 }
 0x592   : > { %s1854_s1 = sshll.u32 %s1850_s29, 4  ;;  %s2842_s15 = scalar_lea.hbm %s4083_s12, 32  ;;  %s1855_s1 = int_to_ptr.hbm [resolvable:$true] %s1854_s1 }
 0x593   : > { %s2836_s20 = sshra.s32 %s1855_s1, 4  ;;  %s2837_s20 = int_to_ptr.hbm [resolvable:$true] %s2836_s20 }
 0x594   : > { %s2838_s21 = scalar_lea.hbm %s2837_s20, 8  ;;  %p2843_p9 = scmp.lt.s32.totalorder %s2837_s20, %s4083_s12 }
 0x595   : > { %p2839_p4 = scmp.ne.s32.totalorder %s2837_s20, %s2838_s21  ;;  %p2844_p10 = scmp.lt.s32.totalorder %s2842_s15, %s2838_s21 }
 0x597   : > { %p2840_p5 = pnand %p2839_p4, %p3075_p6  ;;  %p2845_p11 = por %p2844_p10, %p2843_p9 }
 0x599   : > { %p2841_p8 = pneg %p2840_p5 }
 0x59b   : > { %p2846_p12 = pnand %p2845_p11, %p2841_p8 }
 0x59d   : > { %2849 = shalt.err (!%p2846_p12)
}
 0x59e   : > { %2727 = dma.vmem_to_hbm [thread:$0]  (%p3075_p6), %s1853_s18, 128, %s1855_s1, %s1837_s19  }
 0x59f PF: > { %s4085_s13 = sld [smem:[#allocation17_spill]] }
 0x5a0   : > { %s4086_s17 = sld [smem:[#allocation10_spill]] }
 0x5a5   : > { %p2733_p13 = scmp.ge.s32.totalorder %s4085_s13, 2 }
 0x5a6   : > { %s1866_s28 = sand.u32 1, %s4086_s17  }
 0x5a7   : > { %p2730_p0 = pnand %p2733_p13, %p3082_p7  ;;  %s1867_s9 = scalar_lea.sflag [#allocation8], %s1866_s28 }
 0x5a9   : > { %p2731_p1 = pneg %p2730_p0 }
 0x5ab   : > { %2891 = dma.done.wait (%p2731_p1), %s1867_s9, 128  }
 0x5ac   : > { %2893 = vsyncadd (%p2731_p1), %s1867_s9, 4294967168  ;;  %s27_s22 = sadd.s32 1, %s4085_s13   ;;  %s4088_s29 = sld [smem:[#allocation11_spill]] }
 0x5ad   : > { %p24_p2 = scmp.ge.s32.totalorder %s27_s22, 10   ;;  %s4089_s30 = sld [smem:[#allocation12_spill]] }
 0x5ae   : > { %s4090_s15 = sld [smem:[#allocation23_spill]] }
 0x5af   : > { %s4091_s16 = sld [smem:[#allocation14_spill]] }
 0x5b0   : > { %s4092_s17 = sld [smem:[#allocation15_spill]]  ;;  %26 = sbr.rel (!%p24_p2) target bundleno = 13 (0xd), region = 137 }
 0x5b1   : > { %s4093_s18 = sld [smem:[#allocation16_spill]] }
 0x5b2   : > { %s4094_s19 = sld [smem:[#allocation18_spill]] }
 0x5b3   : > { %s4095_s20 = sld [smem:[#allocation20_spill]] }
 0x5b4   : > { %s4096_s21 = sld [smem:[#allocation22_spill]] }
 0x5b5   :  { %1873 = vsyncpa [#allocation8], 1 }
 0x5b6   :  { %1875 = vsyncpa [#allocation8 + $0x1], 1 }

</bundles_post_ra>
